<compile_context>
chip_gen: v7x
topology: tpu7x:2x2x1
jax: 0.10.0
libtpu: 0.0.40
codegen_flags: <defaults>
</compile_context>

<pallas_src>
import functools

import jax
import jax.numpy as jnp
from jax.experimental import pallas as pl
from jax.experimental.pallas import tpu as pltpu


# ----------------------------------------------------------------------------
# helpers
# ----------------------------------------------------------------------------
def _layer_norm(x, gamma, beta, eps=1e-5):
    mu = jnp.mean(x, axis=-1, keepdims=True)
    var = jnp.mean((x - mu) ** 2, axis=-1, keepdims=True)
    return (x - mu) * jax.lax.rsqrt(var + eps) * gamma + beta


def sinusoidal_position(length, d):
    # (L, D) sinusoidal positional embedding
    inv_freq = 1.0 / (10000.0 ** (jnp.arange(0, d, 2, dtype=jnp.float32) / d))
    pos = jnp.arange(length, dtype=jnp.float32)[:, None]
    ang = pos * inv_freq[None, :]
    return jnp.concatenate([jnp.sin(ang), jnp.cos(ang)], axis=-1)  # (L, D)


def _pick_batch_tile(B, T, target_rows=512):
    """Batch-tile size.

    The grid is a serial loop on single-TC chips (v5e/v6e), so we prefer ONE
    big block (bt = B) whenever B*T <= target_rows.  Blocks only multiply once
    B*T exceeds target_rows, i.e. every block keeps hundreds of MXU rows --
    which is also the condition under which megacore sharding on v7x pays off.
    """
    bt = max(1, min(B, -(-target_rows // max(T, 1))))  # ceil(target_rows / T)
    while bt > 1 and B % bt != 0:
        bt -= 1
    return bt


# ----------------------------------------------------------------------------
# standalone encoder kernel (mtm=False path): z = tanh(x @ W + b)
# ----------------------------------------------------------------------------
def _encoder_kernel(x_ref, w_ref, b_ref, o_ref):
    o_ref[...] = jnp.tanh(
        jnp.dot(x_ref[...].astype(w_ref.dtype), w_ref[...],
                preferred_element_type=jnp.float32)
        + b_ref[...]
    )


def encode_rows(x_flat, w, b, row_tile=512):
    n, f = x_flat.shape
    d = w.shape[1]
    rt = min(row_tile, n)
    # row tile must divide n and be a multiple of 8 (or be the full extent)
    while rt > 1 and (n % rt != 0 or (rt != n and rt % 8 != 0)):
        rt -= 1
    return pl.pallas_call(
        _encoder_kernel,
        out_shape=jax.ShapeDtypeStruct((n, d), jnp.float32),
        grid_spec=pltpu.PrefetchScalarGridSpec(
            num_scalar_prefetch=0,
            grid=(n // rt,),
            in_specs=[
                pl.BlockSpec((rt, f), lambda i: (i, 0)),
                pl.BlockSpec(w.shape, lambda i: (0, 0)),
                pl.BlockSpec(b.shape, lambda i: (0, 0)),
            ],
            out_specs=pl.BlockSpec((rt, d), lambda i: (i, 0)),
        ),
        compiler_params=pltpu.CompilerParams(
            dimension_semantics=("parallel",),
        ),
    )(x_flat, w, b)


# ----------------------------------------------------------------------------
# fused CTMR kernel: encoder + PE add + num_layers x (attention + FFN + post-LN)
# one batch tile (Bt, T, *) per grid step, everything stays in VMEM.
# ----------------------------------------------------------------------------
def _ctmr_fused_kernel(
    obs_ref,    # (Bt, T, F)   bf16
    pe_ref,     # (T, D)       f32
    encw_ref,   # (F, D)       bf16
    encb_ref,   # (1, D)       f32
    wqkv_ref,   # (NL, D, 3D)  bf16  (q-scaling folded in)
    bqkv_ref,   # (NL, 1, 3D)  f32   (q-scaling folded in)
    g1_ref,     # (NL, 1, D)   f32   attn_layer_norm gamma
    be1_ref,    # (NL, 1, D)   f32   attn_layer_norm beta
    w1_ref,     # (NL, D, 2D)  bf16  fc1
    b1_ref,     # (NL, 1, 2D)  f32
    w2_ref,     # (NL, 2D, D)  bf16  fc2
    b2_ref,     # (NL, 1, D)   f32
    g2_ref,     # (NL, 1, D)   f32   final_layer_norm gamma
    be2_ref,    # (NL, 1, D)   f32   final_layer_norm beta
    o_ref,      # (Bt, T, D)   f32
    *,
    num_layers,
    bt,
    t,
    d,
):
    rows = bt * t

    # ---- encoder stand-in: tanh(obs_flat @ W + b), all rows of the tile at once
    xf = obs_ref[...].reshape(rows, -1).astype(jnp.bfloat16)
    z = jnp.dot(xf, encw_ref[...], preferred_element_type=jnp.float32) + encb_ref[...]
    z = jnp.tanh(z)

    # ---- positional embedding add (broadcast over batch within the tile) ----
    x = z.reshape(bt, t, d) + pe_ref[...][None, :, :]

    for l in range(num_layers):
        # ---- MultiheadAttention (num_heads=1, no out_proj) ----
        # single fused QKV matmul (N=3D) batched over all rows of the tile;
        # static 128-lane slices split the result (free vreg selection).
        xr = x.reshape(rows, d).astype(jnp.bfloat16)
        qkv = (jnp.dot(xr, wqkv_ref[l], preferred_element_type=jnp.float32)
               + bqkv_ref[l])
        qb = qkv[:, :d].reshape(bt, t, d)
        kb = qkv[:, d:2 * d].reshape(bt, t, d)
        vb = qkv[:, 2 * d:].reshape(bt, t, d)

        # scores: bf16 operands, f32 accumulation; contract last dims directly
        # (no explicit k.T / XLU transpose).
        s = jnp.einsum("bqd,bkd->bqk",
                       qb.astype(jnp.bfloat16), kb.astype(jnp.bfloat16),
                       preferred_element_type=jnp.float32)
        s = s - jnp.max(s, axis=-1, keepdims=True)
        e = jnp.exp(s)
        denom = jnp.sum(e, axis=-1, keepdims=True)
        p = e * pl.reciprocal(denom, approx=True)      # divide on the EUP slot
        attn = jnp.einsum("bqk,bkd->bqd",
                          p.astype(jnp.bfloat16), vb.astype(jnp.bfloat16),
                          preferred_element_type=jnp.float32)

        # ---- residual + attn LayerNorm (post-norm), f32 math ----
        h = _layer_norm(x + attn, g1_ref[l], be1_ref[l])

        # ---- FFN: fc2(relu(fc1(h))), batched across rows ----
        hr = h.reshape(rows, d).astype(jnp.bfloat16)
        f = jnp.dot(hr, w1_ref[l], preferred_element_type=jnp.float32) + b1_ref[l]
        f = jnp.maximum(f, 0.0)
        f = jnp.dot(f.astype(jnp.bfloat16), w2_ref[l],
                    preferred_element_type=jnp.float32) + b2_ref[l]

        # ---- residual + final LayerNorm (post-norm) ----
        x = _layer_norm(h + f.reshape(bt, t, d), g2_ref[l], be2_ref[l])

    o_ref[...] = x.astype(o_ref.dtype)


def ctmr_fused(obs_flat, pe, fp, *, num_layers):
    """obs_flat: (B, T, F) bf16; pe: (T, D) f32; fp: prepared (stacked) params."""
    B, T, F = obs_flat.shape
    D = pe.shape[-1]
    bt = _pick_batch_tile(B, T)
    grid = (B // bt,)
    # NOTE: T % 8 == 0 keeps the (bt,T,D)<->(bt*T,D) reshapes layout no-ops;
    # other T values are still correct but may pay relayout copies per layer.

    kern = functools.partial(_ctmr_fused_kernel,
                             num_layers=num_layers, bt=bt, t=T, d=D)

    weights = [
        fp["enc_w"], fp["enc_b"],
        fp["wqkv"], fp["bqkv"],
        fp["g1"], fp["be1"], fp["w1"], fp["b1"], fp["w2"], fp["b2"],
        fp["g2"], fp["be2"],
    ]

    weight_bytes = sum(int(w.size) * w.dtype.itemsize for w in weights)
    # Constant-index weight specs still get pipeline buffers; drop to a single
    # buffer only once the stack is large (v7x 64 MiB VMEM hygiene).
    single_buffer_weights = weight_bytes > (8 << 20)
    # TODO(synk): consider fp8 weight quantization for wqkv/w1/w2 on v7x only.

    def full(arr):
        nd = arr.ndim
        idx = lambda i: (0,) * nd
        if single_buffer_weights:
            return pl.BlockSpec(arr.shape, idx, pipeline_mode=pl.Buffered(1))
        return pl.BlockSpec(arr.shape, idx)

    # explicit scoped-VMEM sizing: obs tile + activations + weight stack
    obs_tile_bytes = bt * T * F * obs_flat.dtype.itemsize
    out_tile_bytes = bt * T * D * 4
    act_bytes = bt * T * (10 * D + T) * 4        # qkv / ffn / residual / score temps (f32)
    est = (2 * (obs_tile_bytes + out_tile_bytes)
           + (1 if single_buffer_weights else 2) * weight_bytes
           + act_bytes)
    vmem_limit = int(min(60 << 20, max(2 * est, 32 << 20)))

    return pl.pallas_call(
        kern,
        out_shape=jax.ShapeDtypeStruct((B, T, D), jnp.float32),
        grid_spec=pltpu.PrefetchScalarGridSpec(
            num_scalar_prefetch=0,
            grid=grid,
            in_specs=[
                pl.BlockSpec((bt, T, F), lambda i: (i, 0, 0)),
                full(pe),
            ] + [full(w) for w in weights],
            out_specs=pl.BlockSpec((bt, T, D), lambda i: (i, 0, 0)),
        ),
        compiler_params=pltpu.CompilerParams(
            dimension_semantics=("parallel",),
            vmem_limit_bytes=vmem_limit,
        ),
    )(obs_flat, pe, *weights)


# ----------------------------------------------------------------------------
# wrapper-side parameter prep: fuse QKV, fold scaling, stack layers, bf16 weights
# ----------------------------------------------------------------------------
def prepare_fused_params(params, z_dim):
    d = z_dim
    scaling = float(d) ** (-0.5)   # num_heads = 1 -> head_dim = D
    # fold 1/sqrt(D) into the q-columns of the fused (D, 3D) QKV weight/bias
    col_scale = jnp.concatenate(
        [jnp.full((d,), scaling, jnp.float32), jnp.ones((2 * d,), jnp.float32)])

    wqkv, bqkv = [], []
    g1, be1, w1, b1, w2, b2, g2, be2 = ([] for _ in range(8))
    for lp in params["attn_layers"]:
        wqkv.append((lp["w_in"] * col_scale[None, :]).astype(jnp.bfloat16))
        bqkv.append(lp["b_in"] * col_scale[None, :])
        g1.append(lp["ln1_g"]); be1.append(lp["ln1_b"])
        w1.append(lp["w1"].astype(jnp.bfloat16)); b1.append(lp["b1"])
        w2.append(lp["w2"].astype(jnp.bfloat16)); b2.append(lp["b2"])
        g2.append(lp["ln2_g"]); be2.append(lp["ln2_b"])

    stack = lambda xs: jnp.stack(xs, axis=0)
    return dict(
        enc_w=params["enc_w"].astype(jnp.bfloat16),
        enc_b=params["enc_b"],
        wqkv=stack(wqkv), bqkv=stack(bqkv),
        g1=stack(g1), be1=stack(be1),
        w1=stack(w1), b1=stack(b1),
        w2=stack(w2), b2=stack(b2),
        g2=stack(g2), be2=stack(be2),
    )


# ----------------------------------------------------------------------------
# CTMR forward
# ----------------------------------------------------------------------------
def ctmr_forward(obs, params, mtm=True):
    """obs: (mtm_bsz, T, C, H, W) float32.  Returns (mtm_bsz*T, z_dim)."""
    B, T = obs.shape[:2]
    D = params["enc_w"].shape[1]
    # bf16 obs halves the only per-grid-step streamed DMA (encoder is a stand-in).
    obs_flat = obs.reshape(B, T, -1).astype(jnp.bfloat16)

    if not mtm:
        # encode_obs only, reshaped back to (B*T, D)
        return encode_rows(
            obs_flat.reshape(B * T, -1),
            params["enc_w"].astype(jnp.bfloat16),
            params["enc_b"],
        )

    fp = prepare_fused_params(params, D)
    pe = sinusoidal_position(T, D)            # (T, D)
    out = ctmr_fused(obs_flat, pe, fp, num_layers=len(params["attn_layers"]))
    return out.reshape(-1, D)


# ----------------------------------------------------------------------------
# deterministic parameter construction
# ----------------------------------------------------------------------------
def make_params(key, obs_feat_dim, z_dim, num_attn_layer=2):
    keys = jax.random.split(key, 3 + 5 * num_attn_layer)
    ki = iter(keys)
    scale = 0.05

    params = {
        "enc_w": scale * jax.random.normal(next(ki), (obs_feat_dim, z_dim), jnp.float32),
        "enc_b": scale * jax.random.normal(next(ki), (1, z_dim), jnp.float32),
        "attn_layers": [],
    }
    for _ in range(num_attn_layer):
        layer = {
            "w_in": scale * jax.random.normal(next(ki), (z_dim, 3 * z_dim), jnp.float32),
            "b_in": scale * jax.random.normal(next(ki), (1, 3 * z_dim), jnp.float32),
            "ln1_g": jnp.ones((1, z_dim), jnp.float32),
            "ln1_b": jnp.zeros((1, z_dim), jnp.float32),
            "w1": scale * jax.random.normal(next(ki), (z_dim, 2 * z_dim), jnp.float32),
            "b1": scale * jax.random.normal(next(ki), (1, 2 * z_dim), jnp.float32),
            "w2": scale * jax.random.normal(next(ki), (2 * z_dim, z_dim), jnp.float32),
            "b2": jnp.zeros((1, z_dim), jnp.float32),
            "ln2_g": jnp.ones((1, z_dim), jnp.float32),
            "ln2_b": jnp.zeros((1, z_dim), jnp.float32),
        }
        params["attn_layers"].append(layer)
    return params


# ----------------------------------------------------------------------------
# main
# ----------------------------------------------------------------------------
if __name__ == "__main__":
    key = jax.random.PRNGKey(0)
    k_obs, k_par = jax.random.split(key)

    mtm_bsz, T = 4, 8          # small mtm batch, sequence length (T % 8 == 0)
    C, H, W = 3, 8, 8          # small "pixel" obs frames
    z_dim = 128                # lane-aligned embedding dim

    obs = jax.random.normal(k_obs, (mtm_bsz, T, C, H, W), jnp.float32)
    params = make_params(k_par, C * H * W, z_dim, num_attn_layer=2)

    fwd = jax.jit(ctmr_forward, static_argnames=("mtm",))

    # fused mtm path (encoder + PE + 2 attention layers in one pallas_call)
    out = fwd(obs, params, mtm=True)
    out = jax.block_until_ready(out)
    assert out.shape == (mtm_bsz * T, z_dim)
    assert bool(jnp.all(jnp.isfinite(out)))

    # encoder-only path
    out_enc = fwd(obs, params, mtm=False)
    out_enc = jax.block_until_ready(out_enc)
    assert out_enc.shape == (mtm_bsz * T, z_dim)
    assert bool(jnp.all(jnp.isfinite(out_enc)))

    print("KERNEL_OK")
</pallas_src>

<mosaic_0001>
module attributes {stable_mosaic.version = 11 : i64} {
  func.func @_ctmr_fused_kernel(%arg0: i32, %arg1: memref<4x8x192xbf16, #tpu.memory_space<vmem>>, %arg2: memref<8x128xf32, #tpu.memory_space<vmem>>, %arg3: memref<192x128xbf16, #tpu.memory_space<vmem>>, %arg4: memref<1x128xf32, #tpu.memory_space<vmem>>, %arg5: memref<2x128x384xbf16, #tpu.memory_space<vmem>>, %arg6: memref<2x1x384xf32, #tpu.memory_space<vmem>>, %arg7: memref<2x1x128xf32, #tpu.memory_space<vmem>>, %arg8: memref<2x1x128xf32, #tpu.memory_space<vmem>>, %arg9: memref<2x128x256xbf16, #tpu.memory_space<vmem>>, %arg10: memref<2x1x256xf32, #tpu.memory_space<vmem>>, %arg11: memref<2x256x128xbf16, #tpu.memory_space<vmem>>, %arg12: memref<2x1x128xf32, #tpu.memory_space<vmem>>, %arg13: memref<2x1x128xf32, #tpu.memory_space<vmem>>, %arg14: memref<2x1x128xf32, #tpu.memory_space<vmem>>, %arg15: memref<4x8x128xf32, #tpu.memory_space<vmem>>) attributes {dimension_semantics = [#tpu.dimension_semantics<parallel>], iteration_bounds = array<i64: 1>, scalar_prefetch = 0 : i64, scratch_operands = 0 : i64, tpu.core_type = #tpu.core_type<tc>, window_params = [{transform_indices = @transform_0, window_bounds = array<i64: 4, 8, 192>}, {pipeline_mode = #tpu.pipeline_mode<synchronous>, transform_indices = @transform_1, window_bounds = array<i64: 8, 128>}, {pipeline_mode = #tpu.pipeline_mode<synchronous>, transform_indices = @transform_2, window_bounds = array<i64: 192, 128>}, {pipeline_mode = #tpu.pipeline_mode<synchronous>, transform_indices = @transform_3, window_bounds = array<i64: 1, 128>}, {pipeline_mode = #tpu.pipeline_mode<synchronous>, transform_indices = @transform_4, window_bounds = array<i64: 2, 128, 384>}, {pipeline_mode = #tpu.pipeline_mode<synchronous>, transform_indices = @transform_5, window_bounds = array<i64: 2, 1, 384>}, {pipeline_mode = #tpu.pipeline_mode<synchronous>, transform_indices = @transform_6, window_bounds = array<i64: 2, 1, 128>}, {pipeline_mode = #tpu.pipeline_mode<synchronous>, transform_indices = @transform_7, window_bounds = array<i64: 2, 1, 128>}, {pipeline_mode = #tpu.pipeline_mode<synchronous>, transform_indices = @transform_8, window_bounds = array<i64: 2, 128, 256>}, {pipeline_mode = #tpu.pipeline_mode<synchronous>, transform_indices = @transform_9, window_bounds = array<i64: 2, 1, 256>}, {pipeline_mode = #tpu.pipeline_mode<synchronous>, transform_indices = @transform_10, window_bounds = array<i64: 2, 256, 128>}, {pipeline_mode = #tpu.pipeline_mode<synchronous>, transform_indices = @transform_11, window_bounds = array<i64: 2, 1, 128>}, {pipeline_mode = #tpu.pipeline_mode<synchronous>, transform_indices = @transform_12, window_bounds = array<i64: 2, 1, 128>}, {pipeline_mode = #tpu.pipeline_mode<synchronous>, transform_indices = @transform_13, window_bounds = array<i64: 2, 1, 128>}, {transform_indices = @transform_14, window_bounds = array<i64: 4, 8, 128>}]} {
    %c0 = arith.constant 0 : index
    %c0_0 = arith.constant 0 : index
    %c0_1 = arith.constant 0 : index
    %0 = vector.load %arg1[%c0, %c0_0, %c0_1] : memref<4x8x192xbf16, #tpu.memory_space<vmem>>, vector<4x8x192xbf16>
    %1 = vector.shape_cast %0 : vector<4x8x192xbf16> to vector<32x192xbf16>
    %c0_2 = arith.constant 0 : index
    %c0_3 = arith.constant 0 : index
    %2 = vector.load %arg3[%c0_2, %c0_3] : memref<192x128xbf16, #tpu.memory_space<vmem>>, vector<192x128xbf16>
    %cst = arith.constant dense<0.000000e+00> : vector<32x128xf32>
    %3 = tpu.matmul %1, %2, %cst {dimension_numbers = #tpu.dot_dimension_numbers<[1], [0], [0], [1], [0, 0, 1, 1], [], []>} : vector<32x192xbf16>, vector<192x128xbf16>, vector<32x128xf32> -> vector<32x128xf32>
    %c0_4 = arith.constant 0 : index
    %c0_5 = arith.constant 0 : index
    %4 = vector.load %arg4[%c0_4, %c0_5] : memref<1x128xf32, #tpu.memory_space<vmem>>, vector<1x128xf32>
    %5 = vector.broadcast %4 : vector<1x128xf32> to vector<32x128xf32>
    %6 = arith.addf %3, %5 : vector<32x128xf32>
    %7 = math.tanh %6 : vector<32x128xf32>
    %8 = vector.shape_cast %7 : vector<32x128xf32> to vector<4x8x128xf32>
    %c0_6 = arith.constant 0 : index
    %c0_7 = arith.constant 0 : index
    %9 = vector.load %arg2[%c0_6, %c0_7] : memref<8x128xf32, #tpu.memory_space<vmem>>, vector<8x128xf32>
    %10 = vector.shape_cast %9 : vector<8x128xf32> to vector<1x8x128xf32>
    %11 = vector.broadcast %10 : vector<1x8x128xf32> to vector<4x8x128xf32>
    %12 = arith.addf %8, %11 : vector<4x8x128xf32>
    %13 = vector.shape_cast %12 : vector<4x8x128xf32> to vector<32x128xf32>
    %14 = arith.truncf %13 : vector<32x128xf32> to vector<32x128xbf16>
    %c0_8 = arith.constant 0 : index
    %c0_9 = arith.constant 0 : index
    %c0_10 = arith.constant 0 : index
    %15 = vector.load %arg5[%c0_8, %c0_9, %c0_10] : memref<2x128x384xbf16, #tpu.memory_space<vmem>>, vector<1x128x384xbf16>
    %16 = vector.shape_cast %15 : vector<1x128x384xbf16> to vector<128x384xbf16>
    %cst_11 = arith.constant dense<0.000000e+00> : vector<32x384xf32>
    %17 = tpu.matmul %14, %16, %cst_11 {dimension_numbers = #tpu.dot_dimension_numbers<[1], [0], [0], [1], [0, 0, 1, 1], [], []>} : vector<32x128xbf16>, vector<128x384xbf16>, vector<32x384xf32> -> vector<32x384xf32>
    %c0_12 = arith.constant 0 : index
    %c0_13 = arith.constant 0 : index
    %c0_14 = arith.constant 0 : index
    %18 = vector.load %arg6[%c0_12, %c0_13, %c0_14] : memref<2x1x384xf32, #tpu.memory_space<vmem>>, vector<1x1x384xf32>
    %19 = vector.shape_cast %18 : vector<1x1x384xf32> to vector<1x384xf32>
    %20 = vector.broadcast %19 : vector<1x384xf32> to vector<32x384xf32>
    %21 = arith.addf %17, %20 : vector<32x384xf32>
    %22 = vector.extract_strided_slice %21 {offsets = [0, 0], sizes = [32, 128], strides = [1, 1]} : vector<32x384xf32> to vector<32x128xf32>
    %23 = vector.shape_cast %22 : vector<32x128xf32> to vector<4x8x128xf32>
    %24 = vector.extract_strided_slice %21 {offsets = [0, 128], sizes = [32, 128], strides = [1, 1]} : vector<32x384xf32> to vector<32x128xf32>
    %25 = vector.shape_cast %24 : vector<32x128xf32> to vector<4x8x128xf32>
    %26 = vector.extract_strided_slice %21 {offsets = [0, 256], sizes = [32, 128], strides = [1, 1]} : vector<32x384xf32> to vector<32x128xf32>
    %27 = vector.shape_cast %26 : vector<32x128xf32> to vector<4x8x128xf32>
    %28 = arith.truncf %23 : vector<4x8x128xf32> to vector<4x8x128xbf16>
    %29 = arith.truncf %25 : vector<4x8x128xf32> to vector<4x8x128xbf16>
    "tpu.trace_start"() <{level = 10 : i32, message = "bqd,bkd->bqk"}> : () -> ()
    %cst_15 = arith.constant dense<0.000000e+00> : vector<4x8x8xf32>
    %30 = tpu.matmul %28, %29, %cst_15 {dimension_numbers = #tpu.dot_dimension_numbers<[2], [2], [1], [1], [0, 0, 0, 1, 1, 1], [0], [0]>} : vector<4x8x128xbf16>, vector<4x8x128xbf16>, vector<4x8x8xf32> -> vector<4x8x8xf32>
    "tpu.trace_stop"() : () -> ()
    %cst_16 = arith.constant dense<0xFF800000> : vector<4x8xf32>
    %31 = vector.multi_reduction <maximumf>, %30, %cst_16 [2] : vector<4x8x8xf32> to vector<4x8xf32>
    %32 = vector.shape_cast %31 : vector<4x8xf32> to vector<4x8x1xf32>
    %33 = vector.broadcast %32 : vector<4x8x1xf32> to vector<4x8x8xf32>
    %34 = arith.subf %30, %33 : vector<4x8x8xf32>
    %35 = math.exp %34 : vector<4x8x8xf32>
    %cst_17 = arith.constant dense<0.000000e+00> : vector<4x8xf32>
    %36 = vector.multi_reduction <add>, %35, %cst_17 [2] : vector<4x8x8xf32> to vector<4x8xf32>
    %37 = vector.shape_cast %36 : vector<4x8xf32> to vector<4x8x1xf32>
    %38 = tpu.reciprocal %37 {approx = true} : vector<4x8x1xf32> -> vector<4x8x1xf32>
    %39 = vector.broadcast %38 : vector<4x8x1xf32> to vector<4x8x8xf32>
    %40 = arith.mulf %35, %39 : vector<4x8x8xf32>
    %41 = arith.truncf %40 : vector<4x8x8xf32> to vector<4x8x8xbf16>
    %42 = arith.truncf %27 : vector<4x8x128xf32> to vector<4x8x128xbf16>
    "tpu.trace_start"() <{level = 10 : i32, message = "bqk,bkd->bqd"}> : () -> ()
    %cst_18 = arith.constant dense<0.000000e+00> : vector<4x8x128xf32>
    %43 = tpu.matmul %41, %42, %cst_18 {dimension_numbers = #tpu.dot_dimension_numbers<[2], [1], [1], [2], [0, 0, 0, 1, 1, 2], [0], [0]>} : vector<4x8x8xbf16>, vector<4x8x128xbf16>, vector<4x8x128xf32> -> vector<4x8x128xf32>
    "tpu.trace_stop"() : () -> ()
    %44 = arith.addf %12, %43 : vector<4x8x128xf32>
    %c0_19 = arith.constant 0 : index
    %c0_20 = arith.constant 0 : index
    %c0_21 = arith.constant 0 : index
    %45 = vector.load %arg7[%c0_19, %c0_20, %c0_21] : memref<2x1x128xf32, #tpu.memory_space<vmem>>, vector<1x1x128xf32>
    %46 = vector.shape_cast %45 : vector<1x1x128xf32> to vector<1x128xf32>
    %c0_22 = arith.constant 0 : index
    %c0_23 = arith.constant 0 : index
    %c0_24 = arith.constant 0 : index
    %47 = vector.load %arg8[%c0_22, %c0_23, %c0_24] : memref<2x1x128xf32, #tpu.memory_space<vmem>>, vector<1x1x128xf32>
    %48 = vector.shape_cast %47 : vector<1x1x128xf32> to vector<1x128xf32>
    %cst_25 = arith.constant dense<0.000000e+00> : vector<4x8xf32>
    %49 = vector.multi_reduction <add>, %44, %cst_25 [2] : vector<4x8x128xf32> to vector<4x8xf32>
    %50 = vector.shape_cast %49 : vector<4x8xf32> to vector<4x8x1xf32>
    %cst_26 = arith.constant 1.280000e+02 : f32
    %51 = vector.broadcast %cst_26 : f32 to vector<4x8x1xf32>
    %52 = arith.divf %50, %51 : vector<4x8x1xf32>
    %53 = vector.broadcast %52 : vector<4x8x1xf32> to vector<4x8x128xf32>
    %54 = arith.subf %44, %53 : vector<4x8x128xf32>
    %55 = arith.mulf %54, %54 : vector<4x8x128xf32>
    %cst_27 = arith.constant dense<0.000000e+00> : vector<4x8xf32>
    %56 = vector.multi_reduction <add>, %55, %cst_27 [2] : vector<4x8x128xf32> to vector<4x8xf32>
    %57 = vector.shape_cast %56 : vector<4x8xf32> to vector<4x8x1xf32>
    %cst_28 = arith.constant 1.280000e+02 : f32
    %58 = vector.broadcast %cst_28 : f32 to vector<4x8x1xf32>
    %59 = arith.divf %57, %58 : vector<4x8x1xf32>
    %60 = vector.broadcast %52 : vector<4x8x1xf32> to vector<4x8x128xf32>
    %61 = arith.subf %44, %60 : vector<4x8x128xf32>
    %cst_29 = arith.constant 9.99999974E-6 : f32
    %62 = vector.broadcast %cst_29 : f32 to vector<4x8x1xf32>
    %63 = arith.addf %59, %62 : vector<4x8x1xf32>
    %64 = math.rsqrt %63 : vector<4x8x1xf32>
    %65 = vector.broadcast %64 : vector<4x8x1xf32> to vector<4x8x128xf32>
    %66 = arith.mulf %61, %65 : vector<4x8x128xf32>
    %67 = vector.shape_cast %46 : vector<1x128xf32> to vector<1x1x128xf32>
    %68 = vector.broadcast %67 : vector<1x1x128xf32> to vector<4x8x128xf32>
    %69 = arith.mulf %66, %68 : vector<4x8x128xf32>
    %70 = vector.shape_cast %48 : vector<1x128xf32> to vector<1x1x128xf32>
    %71 = vector.broadcast %70 : vector<1x1x128xf32> to vector<4x8x128xf32>
    %72 = arith.addf %69, %71 : vector<4x8x128xf32>
    %73 = vector.shape_cast %72 : vector<4x8x128xf32> to vector<32x128xf32>
    %74 = arith.truncf %73 : vector<32x128xf32> to vector<32x128xbf16>
    %c0_30 = arith.constant 0 : index
    %c0_31 = arith.constant 0 : index
    %c0_32 = arith.constant 0 : index
    %75 = vector.load %arg9[%c0_30, %c0_31, %c0_32] : memref<2x128x256xbf16, #tpu.memory_space<vmem>>, vector<1x128x256xbf16>
    %76 = vector.shape_cast %75 : vector<1x128x256xbf16> to vector<128x256xbf16>
    %cst_33 = arith.constant dense<0.000000e+00> : vector<32x256xf32>
    %77 = tpu.matmul %74, %76, %cst_33 {dimension_numbers = #tpu.dot_dimension_numbers<[1], [0], [0], [1], [0, 0, 1, 1], [], []>} : vector<32x128xbf16>, vector<128x256xbf16>, vector<32x256xf32> -> vector<32x256xf32>
    %c0_34 = arith.constant 0 : index
    %c0_35 = arith.constant 0 : index
    %c0_36 = arith.constant 0 : index
    %78 = vector.load %arg10[%c0_34, %c0_35, %c0_36] : memref<2x1x256xf32, #tpu.memory_space<vmem>>, vector<1x1x256xf32>
    %79 = vector.shape_cast %78 : vector<1x1x256xf32> to vector<1x256xf32>
    %80 = vector.broadcast %79 : vector<1x256xf32> to vector<32x256xf32>
    %81 = arith.addf %77, %80 : vector<32x256xf32>
    %cst_37 = arith.constant 0.000000e+00 : f32
    %82 = vector.broadcast %cst_37 : f32 to vector<32x256xf32>
    %83 = arith.maximumf %81, %82 : vector<32x256xf32>
    %84 = arith.truncf %83 : vector<32x256xf32> to vector<32x256xbf16>
    %c0_38 = arith.constant 0 : index
    %c0_39 = arith.constant 0 : index
    %c0_40 = arith.constant 0 : index
    %85 = vector.load %arg11[%c0_38, %c0_39, %c0_40] : memref<2x256x128xbf16, #tpu.memory_space<vmem>>, vector<1x256x128xbf16>
    %86 = vector.shape_cast %85 : vector<1x256x128xbf16> to vector<256x128xbf16>
    %cst_41 = arith.constant dense<0.000000e+00> : vector<32x128xf32>
    %87 = tpu.matmul %84, %86, %cst_41 {dimension_numbers = #tpu.dot_dimension_numbers<[1], [0], [0], [1], [0, 0, 1, 1], [], []>} : vector<32x256xbf16>, vector<256x128xbf16>, vector<32x128xf32> -> vector<32x128xf32>
    %c0_42 = arith.constant 0 : index
    %c0_43 = arith.constant 0 : index
    %c0_44 = arith.constant 0 : index
    %88 = vector.load %arg12[%c0_42, %c0_43, %c0_44] : memref<2x1x128xf32, #tpu.memory_space<vmem>>, vector<1x1x128xf32>
    %89 = vector.shape_cast %88 : vector<1x1x128xf32> to vector<1x128xf32>
    %90 = vector.broadcast %89 : vector<1x128xf32> to vector<32x128xf32>
    %91 = arith.addf %87, %90 : vector<32x128xf32>
    %92 = vector.shape_cast %91 : vector<32x128xf32> to vector<4x8x128xf32>
    %93 = arith.addf %72, %92 : vector<4x8x128xf32>
    %c0_45 = arith.constant 0 : index
    %c0_46 = arith.constant 0 : index
    %c0_47 = arith.constant 0 : index
    %94 = vector.load %arg13[%c0_45, %c0_46, %c0_47] : memref<2x1x128xf32, #tpu.memory_space<vmem>>, vector<1x1x128xf32>
    %95 = vector.shape_cast %94 : vector<1x1x128xf32> to vector<1x128xf32>
    %c0_48 = arith.constant 0 : index
    %c0_49 = arith.constant 0 : index
    %c0_50 = arith.constant 0 : index
    %96 = vector.load %arg14[%c0_48, %c0_49, %c0_50] : memref<2x1x128xf32, #tpu.memory_space<vmem>>, vector<1x1x128xf32>
    %97 = vector.shape_cast %96 : vector<1x1x128xf32> to vector<1x128xf32>
    %cst_51 = arith.constant dense<0.000000e+00> : vector<4x8xf32>
    %98 = vector.multi_reduction <add>, %93, %cst_51 [2] : vector<4x8x128xf32> to vector<4x8xf32>
    %99 = vector.shape_cast %98 : vector<4x8xf32> to vector<4x8x1xf32>
    %cst_52 = arith.constant 1.280000e+02 : f32
    %100 = vector.broadcast %cst_52 : f32 to vector<4x8x1xf32>
    %101 = arith.divf %99, %100 : vector<4x8x1xf32>
    %102 = vector.broadcast %101 : vector<4x8x1xf32> to vector<4x8x128xf32>
    %103 = arith.subf %93, %102 : vector<4x8x128xf32>
    %104 = arith.mulf %103, %103 : vector<4x8x128xf32>
    %cst_53 = arith.constant dense<0.000000e+00> : vector<4x8xf32>
    %105 = vector.multi_reduction <add>, %104, %cst_53 [2] : vector<4x8x128xf32> to vector<4x8xf32>
    %106 = vector.shape_cast %105 : vector<4x8xf32> to vector<4x8x1xf32>
    %cst_54 = arith.constant 1.280000e+02 : f32
    %107 = vector.broadcast %cst_54 : f32 to vector<4x8x1xf32>
    %108 = arith.divf %106, %107 : vector<4x8x1xf32>
    %109 = vector.broadcast %101 : vector<4x8x1xf32> to vector<4x8x128xf32>
    %110 = arith.subf %93, %109 : vector<4x8x128xf32>
    %cst_55 = arith.constant 9.99999974E-6 : f32
    %111 = vector.broadcast %cst_55 : f32 to vector<4x8x1xf32>
    %112 = arith.addf %108, %111 : vector<4x8x1xf32>
    %113 = math.rsqrt %112 : vector<4x8x1xf32>
    %114 = vector.broadcast %113 : vector<4x8x1xf32> to vector<4x8x128xf32>
    %115 = arith.mulf %110, %114 : vector<4x8x128xf32>
    %116 = vector.shape_cast %95 : vector<1x128xf32> to vector<1x1x128xf32>
    %117 = vector.broadcast %116 : vector<1x1x128xf32> to vector<4x8x128xf32>
    %118 = arith.mulf %115, %117 : vector<4x8x128xf32>
    %119 = vector.shape_cast %97 : vector<1x128xf32> to vector<1x1x128xf32>
    %120 = vector.broadcast %119 : vector<1x1x128xf32> to vector<4x8x128xf32>
    %121 = arith.addf %118, %120 : vector<4x8x128xf32>
    %122 = vector.shape_cast %121 : vector<4x8x128xf32> to vector<32x128xf32>
    %123 = arith.truncf %122 : vector<32x128xf32> to vector<32x128xbf16>
    %c1 = arith.constant 1 : index
    %c0_56 = arith.constant 0 : index
    %c0_57 = arith.constant 0 : index
    %124 = vector.load %arg5[%c1, %c0_56, %c0_57] : memref<2x128x384xbf16, #tpu.memory_space<vmem>>, vector<1x128x384xbf16>
    %125 = vector.shape_cast %124 : vector<1x128x384xbf16> to vector<128x384xbf16>
    %cst_58 = arith.constant dense<0.000000e+00> : vector<32x384xf32>
    %126 = tpu.matmul %123, %125, %cst_58 {dimension_numbers = #tpu.dot_dimension_numbers<[1], [0], [0], [1], [0, 0, 1, 1], [], []>} : vector<32x128xbf16>, vector<128x384xbf16>, vector<32x384xf32> -> vector<32x384xf32>
    %c1_59 = arith.constant 1 : index
    %c0_60 = arith.constant 0 : index
    %c0_61 = arith.constant 0 : index
    %127 = vector.load %arg6[%c1_59, %c0_60, %c0_61] : memref<2x1x384xf32, #tpu.memory_space<vmem>>, vector<1x1x384xf32>
    %128 = vector.shape_cast %127 : vector<1x1x384xf32> to vector<1x384xf32>
    %129 = vector.broadcast %128 : vector<1x384xf32> to vector<32x384xf32>
    %130 = arith.addf %126, %129 : vector<32x384xf32>
    %131 = vector.extract_strided_slice %130 {offsets = [0, 0], sizes = [32, 128], strides = [1, 1]} : vector<32x384xf32> to vector<32x128xf32>
    %132 = vector.shape_cast %131 : vector<32x128xf32> to vector<4x8x128xf32>
    %133 = vector.extract_strided_slice %130 {offsets = [0, 128], sizes = [32, 128], strides = [1, 1]} : vector<32x384xf32> to vector<32x128xf32>
    %134 = vector.shape_cast %133 : vector<32x128xf32> to vector<4x8x128xf32>
    %135 = vector.extract_strided_slice %130 {offsets = [0, 256], sizes = [32, 128], strides = [1, 1]} : vector<32x384xf32> to vector<32x128xf32>
    %136 = vector.shape_cast %135 : vector<32x128xf32> to vector<4x8x128xf32>
    %137 = arith.truncf %132 : vector<4x8x128xf32> to vector<4x8x128xbf16>
    %138 = arith.truncf %134 : vector<4x8x128xf32> to vector<4x8x128xbf16>
    "tpu.trace_start"() <{level = 10 : i32, message = "bqd,bkd->bqk"}> : () -> ()
    %cst_62 = arith.constant dense<0.000000e+00> : vector<4x8x8xf32>
    %139 = tpu.matmul %137, %138, %cst_62 {dimension_numbers = #tpu.dot_dimension_numbers<[2], [2], [1], [1], [0, 0, 0, 1, 1, 1], [0], [0]>} : vector<4x8x128xbf16>, vector<4x8x128xbf16>, vector<4x8x8xf32> -> vector<4x8x8xf32>
    "tpu.trace_stop"() : () -> ()
    %cst_63 = arith.constant dense<0xFF800000> : vector<4x8xf32>
    %140 = vector.multi_reduction <maximumf>, %139, %cst_63 [2] : vector<4x8x8xf32> to vector<4x8xf32>
    %141 = vector.shape_cast %140 : vector<4x8xf32> to vector<4x8x1xf32>
    %142 = vector.broadcast %141 : vector<4x8x1xf32> to vector<4x8x8xf32>
    %143 = arith.subf %139, %142 : vector<4x8x8xf32>
    %144 = math.exp %143 : vector<4x8x8xf32>
    %cst_64 = arith.constant dense<0.000000e+00> : vector<4x8xf32>
    %145 = vector.multi_reduction <add>, %144, %cst_64 [2] : vector<4x8x8xf32> to vector<4x8xf32>
    %146 = vector.shape_cast %145 : vector<4x8xf32> to vector<4x8x1xf32>
    %147 = tpu.reciprocal %146 {approx = true} : vector<4x8x1xf32> -> vector<4x8x1xf32>
    %148 = vector.broadcast %147 : vector<4x8x1xf32> to vector<4x8x8xf32>
    %149 = arith.mulf %144, %148 : vector<4x8x8xf32>
    %150 = arith.truncf %149 : vector<4x8x8xf32> to vector<4x8x8xbf16>
    %151 = arith.truncf %136 : vector<4x8x128xf32> to vector<4x8x128xbf16>
    "tpu.trace_start"() <{level = 10 : i32, message = "bqk,bkd->bqd"}> : () -> ()
    %cst_65 = arith.constant dense<0.000000e+00> : vector<4x8x128xf32>
    %152 = tpu.matmul %150, %151, %cst_65 {dimension_numbers = #tpu.dot_dimension_numbers<[2], [1], [1], [2], [0, 0, 0, 1, 1, 2], [0], [0]>} : vector<4x8x8xbf16>, vector<4x8x128xbf16>, vector<4x8x128xf32> -> vector<4x8x128xf32>
    "tpu.trace_stop"() : () -> ()
    %153 = arith.addf %121, %152 : vector<4x8x128xf32>
    %c1_66 = arith.constant 1 : index
    %c0_67 = arith.constant 0 : index
    %c0_68 = arith.constant 0 : index
    %154 = vector.load %arg7[%c1_66, %c0_67, %c0_68] : memref<2x1x128xf32, #tpu.memory_space<vmem>>, vector<1x1x128xf32>
    %155 = vector.shape_cast %154 : vector<1x1x128xf32> to vector<1x128xf32>
    %c1_69 = arith.constant 1 : index
    %c0_70 = arith.constant 0 : index
    %c0_71 = arith.constant 0 : index
    %156 = vector.load %arg8[%c1_69, %c0_70, %c0_71] : memref<2x1x128xf32, #tpu.memory_space<vmem>>, vector<1x1x128xf32>
    %157 = vector.shape_cast %156 : vector<1x1x128xf32> to vector<1x128xf32>
    %cst_72 = arith.constant dense<0.000000e+00> : vector<4x8xf32>
    %158 = vector.multi_reduction <add>, %153, %cst_72 [2] : vector<4x8x128xf32> to vector<4x8xf32>
    %159 = vector.shape_cast %158 : vector<4x8xf32> to vector<4x8x1xf32>
    %cst_73 = arith.constant 1.280000e+02 : f32
    %160 = vector.broadcast %cst_73 : f32 to vector<4x8x1xf32>
    %161 = arith.divf %159, %160 : vector<4x8x1xf32>
    %162 = vector.broadcast %161 : vector<4x8x1xf32> to vector<4x8x128xf32>
    %163 = arith.subf %153, %162 : vector<4x8x128xf32>
    %164 = arith.mulf %163, %163 : vector<4x8x128xf32>
    %cst_74 = arith.constant dense<0.000000e+00> : vector<4x8xf32>
    %165 = vector.multi_reduction <add>, %164, %cst_74 [2] : vector<4x8x128xf32> to vector<4x8xf32>
    %166 = vector.shape_cast %165 : vector<4x8xf32> to vector<4x8x1xf32>
    %cst_75 = arith.constant 1.280000e+02 : f32
    %167 = vector.broadcast %cst_75 : f32 to vector<4x8x1xf32>
    %168 = arith.divf %166, %167 : vector<4x8x1xf32>
    %169 = vector.broadcast %161 : vector<4x8x1xf32> to vector<4x8x128xf32>
    %170 = arith.subf %153, %169 : vector<4x8x128xf32>
    %cst_76 = arith.constant 9.99999974E-6 : f32
    %171 = vector.broadcast %cst_76 : f32 to vector<4x8x1xf32>
    %172 = arith.addf %168, %171 : vector<4x8x1xf32>
    %173 = math.rsqrt %172 : vector<4x8x1xf32>
    %174 = vector.broadcast %173 : vector<4x8x1xf32> to vector<4x8x128xf32>
    %175 = arith.mulf %170, %174 : vector<4x8x128xf32>
    %176 = vector.shape_cast %155 : vector<1x128xf32> to vector<1x1x128xf32>
    %177 = vector.broadcast %176 : vector<1x1x128xf32> to vector<4x8x128xf32>
    %178 = arith.mulf %175, %177 : vector<4x8x128xf32>
    %179 = vector.shape_cast %157 : vector<1x128xf32> to vector<1x1x128xf32>
    %180 = vector.broadcast %179 : vector<1x1x128xf32> to vector<4x8x128xf32>
    %181 = arith.addf %178, %180 : vector<4x8x128xf32>
    %182 = vector.shape_cast %181 : vector<4x8x128xf32> to vector<32x128xf32>
    %183 = arith.truncf %182 : vector<32x128xf32> to vector<32x128xbf16>
    %c1_77 = arith.constant 1 : index
    %c0_78 = arith.constant 0 : index
    %c0_79 = arith.constant 0 : index
    %184 = vector.load %arg9[%c1_77, %c0_78, %c0_79] : memref<2x128x256xbf16, #tpu.memory_space<vmem>>, vector<1x128x256xbf16>
    %185 = vector.shape_cast %184 : vector<1x128x256xbf16> to vector<128x256xbf16>
    %cst_80 = arith.constant dense<0.000000e+00> : vector<32x256xf32>
    %186 = tpu.matmul %183, %185, %cst_80 {dimension_numbers = #tpu.dot_dimension_numbers<[1], [0], [0], [1], [0, 0, 1, 1], [], []>} : vector<32x128xbf16>, vector<128x256xbf16>, vector<32x256xf32> -> vector<32x256xf32>
    %c1_81 = arith.constant 1 : index
    %c0_82 = arith.constant 0 : index
    %c0_83 = arith.constant 0 : index
    %187 = vector.load %arg10[%c1_81, %c0_82, %c0_83] : memref<2x1x256xf32, #tpu.memory_space<vmem>>, vector<1x1x256xf32>
    %188 = vector.shape_cast %187 : vector<1x1x256xf32> to vector<1x256xf32>
    %189 = vector.broadcast %188 : vector<1x256xf32> to vector<32x256xf32>
    %190 = arith.addf %186, %189 : vector<32x256xf32>
    %cst_84 = arith.constant 0.000000e+00 : f32
    %191 = vector.broadcast %cst_84 : f32 to vector<32x256xf32>
    %192 = arith.maximumf %190, %191 : vector<32x256xf32>
    %193 = arith.truncf %192 : vector<32x256xf32> to vector<32x256xbf16>
    %c1_85 = arith.constant 1 : index
    %c0_86 = arith.constant 0 : index
    %c0_87 = arith.constant 0 : index
    %194 = vector.load %arg11[%c1_85, %c0_86, %c0_87] : memref<2x256x128xbf16, #tpu.memory_space<vmem>>, vector<1x256x128xbf16>
    %195 = vector.shape_cast %194 : vector<1x256x128xbf16> to vector<256x128xbf16>
    %cst_88 = arith.constant dense<0.000000e+00> : vector<32x128xf32>
    %196 = tpu.matmul %193, %195, %cst_88 {dimension_numbers = #tpu.dot_dimension_numbers<[1], [0], [0], [1], [0, 0, 1, 1], [], []>} : vector<32x256xbf16>, vector<256x128xbf16>, vector<32x128xf32> -> vector<32x128xf32>
    %c1_89 = arith.constant 1 : index
    %c0_90 = arith.constant 0 : index
    %c0_91 = arith.constant 0 : index
    %197 = vector.load %arg12[%c1_89, %c0_90, %c0_91] : memref<2x1x128xf32, #tpu.memory_space<vmem>>, vector<1x1x128xf32>
    %198 = vector.shape_cast %197 : vector<1x1x128xf32> to vector<1x128xf32>
    %199 = vector.broadcast %198 : vector<1x128xf32> to vector<32x128xf32>
    %200 = arith.addf %196, %199 : vector<32x128xf32>
    %201 = vector.shape_cast %200 : vector<32x128xf32> to vector<4x8x128xf32>
    %202 = arith.addf %181, %201 : vector<4x8x128xf32>
    %c1_92 = arith.constant 1 : index
    %c0_93 = arith.constant 0 : index
    %c0_94 = arith.constant 0 : index
    %203 = vector.load %arg13[%c1_92, %c0_93, %c0_94] : memref<2x1x128xf32, #tpu.memory_space<vmem>>, vector<1x1x128xf32>
    %204 = vector.shape_cast %203 : vector<1x1x128xf32> to vector<1x128xf32>
    %c1_95 = arith.constant 1 : index
    %c0_96 = arith.constant 0 : index
    %c0_97 = arith.constant 0 : index
    %205 = vector.load %arg14[%c1_95, %c0_96, %c0_97] : memref<2x1x128xf32, #tpu.memory_space<vmem>>, vector<1x1x128xf32>
    %206 = vector.shape_cast %205 : vector<1x1x128xf32> to vector<1x128xf32>
    %cst_98 = arith.constant dense<0.000000e+00> : vector<4x8xf32>
    %207 = vector.multi_reduction <add>, %202, %cst_98 [2] : vector<4x8x128xf32> to vector<4x8xf32>
    %208 = vector.shape_cast %207 : vector<4x8xf32> to vector<4x8x1xf32>
    %cst_99 = arith.constant 1.280000e+02 : f32
    %209 = vector.broadcast %cst_99 : f32 to vector<4x8x1xf32>
    %210 = arith.divf %208, %209 : vector<4x8x1xf32>
    %211 = vector.broadcast %210 : vector<4x8x1xf32> to vector<4x8x128xf32>
    %212 = arith.subf %202, %211 : vector<4x8x128xf32>
    %213 = arith.mulf %212, %212 : vector<4x8x128xf32>
    %cst_100 = arith.constant dense<0.000000e+00> : vector<4x8xf32>
    %214 = vector.multi_reduction <add>, %213, %cst_100 [2] : vector<4x8x128xf32> to vector<4x8xf32>
    %215 = vector.shape_cast %214 : vector<4x8xf32> to vector<4x8x1xf32>
    %cst_101 = arith.constant 1.280000e+02 : f32
    %216 = vector.broadcast %cst_101 : f32 to vector<4x8x1xf32>
    %217 = arith.divf %215, %216 : vector<4x8x1xf32>
    %218 = vector.broadcast %210 : vector<4x8x1xf32> to vector<4x8x128xf32>
    %219 = arith.subf %202, %218 : vector<4x8x128xf32>
    %cst_102 = arith.constant 9.99999974E-6 : f32
    %220 = vector.broadcast %cst_102 : f32 to vector<4x8x1xf32>
    %221 = arith.addf %217, %220 : vector<4x8x1xf32>
    %222 = math.rsqrt %221 : vector<4x8x1xf32>
    %223 = vector.broadcast %222 : vector<4x8x1xf32> to vector<4x8x128xf32>
    %224 = arith.mulf %219, %223 : vector<4x8x128xf32>
    %225 = vector.shape_cast %204 : vector<1x128xf32> to vector<1x1x128xf32>
    %226 = vector.broadcast %225 : vector<1x1x128xf32> to vector<4x8x128xf32>
    %227 = arith.mulf %224, %226 : vector<4x8x128xf32>
    %228 = vector.shape_cast %206 : vector<1x128xf32> to vector<1x1x128xf32>
    %229 = vector.broadcast %228 : vector<1x1x128xf32> to vector<4x8x128xf32>
    %230 = arith.addf %227, %229 : vector<4x8x128xf32>
    %c0_103 = arith.constant 0 : index
    %c0_104 = arith.constant 0 : index
    %c0_105 = arith.constant 0 : index
    %231 = vector.load %arg15[%c0_103, %c0_104, %c0_105] : memref<4x8x128xf32, #tpu.memory_space<vmem>>, vector<4x8x128xf32>
    tpu.vector_store %arg15[%c0_103, %c0_104, %c0_105], %230 {strides = array<i32>} : memref<4x8x128xf32, #tpu.memory_space<vmem>>, vector<4x8x128xf32>,
    return
  }
  func.func @transform_0(%arg0: i32) -> (i32, i32, i32) {
    %c0_i32 = arith.constant 0 : i32
    %c0_i32_0 = arith.constant 0 : i32
    %c0_i32_1 = arith.constant 0 : i32
    return %arg0, %c0_i32, %c0_i32_0 : i32, i32, i32
  }
  func.func @transform_1(%arg0: i32) -> (i32, i32) {
    %c0_i32 = arith.constant 0 : i32
    %c0_i32_0 = arith.constant 0 : i32
    %c0_i32_1 = arith.constant 0 : i32
    return %c0_i32, %c0_i32_0 : i32, i32
  }
  func.func @transform_2(%arg0: i32) -> (i32, i32) {
    %c0_i32 = arith.constant 0 : i32
    %c0_i32_0 = arith.constant 0 : i32
    %c0_i32_1 = arith.constant 0 : i32
    return %c0_i32, %c0_i32_0 : i32, i32
  }
  func.func @transform_3(%arg0: i32) -> (i32, i32) {
    %c0_i32 = arith.constant 0 : i32
    %c0_i32_0 = arith.constant 0 : i32
    %c0_i32_1 = arith.constant 0 : i32
    return %c0_i32, %c0_i32_0 : i32, i32
  }
  func.func @transform_4(%arg0: i32) -> (i32, i32, i32) {
    %c0_i32 = arith.constant 0 : i32
    %c0_i32_0 = arith.constant 0 : i32
    %c0_i32_1 = arith.constant 0 : i32
    %c0_i32_2 = arith.constant 0 : i32
    return %c0_i32, %c0_i32_0, %c0_i32_1 : i32, i32, i32
  }
  func.func @transform_5(%arg0: i32) -> (i32, i32, i32) {
    %c0_i32 = arith.constant 0 : i32
    %c0_i32_0 = arith.constant 0 : i32
    %c0_i32_1 = arith.constant 0 : i32
    %c0_i32_2 = arith.constant 0 : i32
    return %c0_i32, %c0_i32_0, %c0_i32_1 : i32, i32, i32
  }
  func.func @transform_6(%arg0: i32) -> (i32, i32, i32) {
    %c0_i32 = arith.constant 0 : i32
    %c0_i32_0 = arith.constant 0 : i32
    %c0_i32_1 = arith.constant 0 : i32
    %c0_i32_2 = arith.constant 0 : i32
    return %c0_i32, %c0_i32_0, %c0_i32_1 : i32, i32, i32
  }
  func.func @transform_7(%arg0: i32) -> (i32, i32, i32) {
    %c0_i32 = arith.constant 0 : i32
    %c0_i32_0 = arith.constant 0 : i32
    %c0_i32_1 = arith.constant 0 : i32
    %c0_i32_2 = arith.constant 0 : i32
    return %c0_i32, %c0_i32_0, %c0_i32_1 : i32, i32, i32
  }
  func.func @transform_8(%arg0: i32) -> (i32, i32, i32) {
    %c0_i32 = arith.constant 0 : i32
    %c0_i32_0 = arith.constant 0 : i32
    %c0_i32_1 = arith.constant 0 : i32
    %c0_i32_2 = arith.constant 0 : i32
    return %c0_i32, %c0_i32_0, %c0_i32_1 : i32, i32, i32
  }
  func.func @transform_9(%arg0: i32) -> (i32, i32, i32) {
    %c0_i32 = arith.constant 0 : i32
    %c0_i32_0 = arith.constant 0 : i32
    %c0_i32_1 = arith.constant 0 : i32
    %c0_i32_2 = arith.constant 0 : i32
    return %c0_i32, %c0_i32_0, %c0_i32_1 : i32, i32, i32
  }
  func.func @transform_10(%arg0: i32) -> (i32, i32, i32) {
    %c0_i32 = arith.constant 0 : i32
    %c0_i32_0 = arith.constant 0 : i32
    %c0_i32_1 = arith.constant 0 : i32
    %c0_i32_2 = arith.constant 0 : i32
    return %c0_i32, %c0_i32_0, %c0_i32_1 : i32, i32, i32
  }
  func.func @transform_11(%arg0: i32) -> (i32, i32, i32) {
    %c0_i32 = arith.constant 0 : i32
    %c0_i32_0 = arith.constant 0 : i32
    %c0_i32_1 = arith.constant 0 : i32
    %c0_i32_2 = arith.constant 0 : i32
    return %c0_i32, %c0_i32_0, %c0_i32_1 : i32, i32, i32
  }
  func.func @transform_12(%arg0: i32) -> (i32, i32, i32) {
    %c0_i32 = arith.constant 0 : i32
    %c0_i32_0 = arith.constant 0 : i32
    %c0_i32_1 = arith.constant 0 : i32
    %c0_i32_2 = arith.constant 0 : i32
    return %c0_i32, %c0_i32_0, %c0_i32_1 : i32, i32, i32
  }
  func.func @transform_13(%arg0: i32) -> (i32, i32, i32) {
    %c0_i32 = arith.constant 0 : i32
    %c0_i32_0 = arith.constant 0 : i32
    %c0_i32_1 = arith.constant 0 : i32
    %c0_i32_2 = arith.constant 0 : i32
    return %c0_i32, %c0_i32_0, %c0_i32_1 : i32, i32, i32
  }
  func.func @transform_14(%arg0: i32) -> (i32, i32, i32) {
    %c0_i32 = arith.constant 0 : i32
    %c0_i32_0 = arith.constant 0 : i32
    %c0_i32_1 = arith.constant 0 : i32
    return %arg0, %c0_i32, %c0_i32_0 : i32, i32, i32
  }
}

</mosaic_0001>

<bundles_post_ra>
// kernel: ctmr_forward.1
= control target key start
LH: loop header
LB: loop body
LE: loop exit
PB: predicated region body
PF: predicated region fallthrough
CT: control target
= control target key end

     0   :  { %v3384_v1 = vmov 0   ;;  %vm174_vm0 = vcmask 523264   ;;  %s4172_s0 = inlined_call_operand.vmem [shape: bf16[4,8,192], index: 0, kind: input, shape index: {}]   ;;  %s4173_s1 = inlined_call_operand.vmem [shape: f32[8,128], index: 1, kind: input, shape index: {}]   ;;  %s4174_s2 = inlined_call_operand.vmem [shape: bf16[192,128], index: 2, kind: input, shape index: {}]   ;;  %s4175_s3 = inlined_call_operand.vmem [shape: f32[1,128], index: 3, kind: input, shape index: {}]   ;;  %s4176_s4 = inlined_call_operand.vmem [shape: bf16[2,128,384], index: 4, kind: input, shape index: {}]   ;;  %s4177_s5 = inlined_call_operand.vmem [shape: f32[2,1,384], index: 5, kind: input, shape index: {}]   ;;  %s4178_s6 = inlined_call_operand.vmem [shape: f32[2,1,128], index: 6, kind: input, shape index: {}]   ;;  %s4179_s7 = inlined_call_operand.vmem [shape: f32[2,1,128], index: 7, kind: input, shape index: {}]   ;;  %s4180_s8 = inlined_call_operand.vmem [shape: bf16[2,128,256], index: 8, kind: input, shape index: {}]   ;;  %s4181_s9 = inlined_call_operand.vmem [shape: f32[2,1,256], index: 9, kind: input, shape index: {}]   ;;  %s4182_s10 = inlined_call_operand.vmem [shape: bf16[2,256,128], index: 10, kind: input, shape index: {}]   ;;  %s4183_s11 = inlined_call_operand.vmem [shape: f32[2,1,128], index: 11, kind: input, shape index: {}]   ;;  %s4184_s12 = inlined_call_operand.vmem [shape: f32[2,1,128], index: 12, kind: input, shape index: {}]   ;;  %s4185_s13 = inlined_call_operand.vmem [shape: f32[2,1,128], index: 13, kind: input, shape index: {}]   ;;  %s4186_s14 = inlined_call_operand.hbm [shape: f32[4,8,128], index: 14, kind: output, shape index: {}]  }
   0x1   :  { %v3126_v0 = vld [vmem:[%s4174_s2] sm:$0xff]   ;;  %181 = vmatprep.subr.bf16.mxu0 %v3384_v1  ;;  %450 = vmatprep.mubr.bf16.mxu1 %v3384_v1  ;;  %v3127_v2 = vld [vmem:[%s4174_s2 + $0x8] sm:$0xff]   ;;  %v3128_v3 = vld [vmem:[%s4174_s2 + $0x10] sm:$0xff]  }
   0x2   :  { %182 = vmatpush1.bf16.msra.mxu0 %v3126_v0  ;;  %v3129_v4 = vld [vmem:[%s4174_s2 + $0x18] sm:$0xff]   ;;  %v3140_v5 = vld [vmem:[%s4172_s0 + $0x4] ss:$8 sps:$4 sm:$0xff]   ;;  %v3150_v12 = vld [vmem:[%s4176_s4 + $0x34] ss:$12 sps:$4 sm:$0xff]  }
   0x3   :  { %183 = vmatprep.subr.bf16.mxu0 %v3384_v1  ;;  %v3130_v6 = vld [vmem:[%s4174_s2 + $0x20] sm:$0xff]   ;;  %2657 = vmatprep.mubr.msk.bf16.mxu0 %vm174_vm0, %v3140_v5  ;;  %v3147_v9 = vld [vmem:[%s4176_s4 + $0x1c] ss:$12 sps:$4 sm:$0xff]   ;;  %v3132_v13 = vld [vmem:[%s4174_s2 + $0x30] sm:$0xff]  }
   0x4   :  { %v3144_v7 = vld [vmem:[%s4176_s4 + $0x4] ss:$12 sps:$4 sm:$0xff]   ;;  %v3146_v8 = vld [vmem:[%s4176_s4] ss:$12 sps:$4 sm:$0xff]   ;;  %v3133_v16 = vld [vmem:[%s4174_s2 + $0x38] sm:$0xff]  }
   0x5   :  { %418 = vmatprep.subr.bf16.mxu1 %v3144_v7  ;;  %v3131_v10 = vld [vmem:[%s4174_s2 + $0x28] sm:$0xff]   ;;  %v3149_v11 = vld [vmem:[%s4176_s4 + $0x18] ss:$12 sps:$4 sm:$0xff]   ;;  %v3152_v14 = vld [vmem:[%s4176_s4 + $0x30] ss:$12 sps:$4 sm:$0xff]  }
   0x6   :  { %184 = vmatpush1.bf16.msra.mxu0 %v3127_v2  ;;  %419 = vmatpush1.bf16.msra.mxu1 %v3146_v8  ;;  %v3153_v15 = vld [vmem:[%s4176_s4 + $0x4c] ss:$12 sps:$4 sm:$0xff]   ;;  %v3134_v17 = vld [vmem:[%s4174_s2 + $0x40] sm:$0xff]   ;;  %v3136_v19 = vld [vmem:[%s4174_s2 + $0x50] sm:$0xff]  }
   0x7   :  { %185 = vmatprep.subr.bf16.mxu0 %v3384_v1  ;;  %420 = vmatprep.subr.bf16.mxu1 %v3147_v9  ;;  %v3135_v18 = vld [vmem:[%s4174_s2 + $0x48] sm:$0xff]   ;;  %v3137_v20 = vld [vmem:[%s4174_s2 + $0x58] sm:$0xff]  }
   0x8   :  { %v3138_v21 = vld [vmem:[%s4172_s0] ss:$8 sps:$4 sm:$0xff]   ;;  %v3141_v22 = vld [vmem:[%s4172_s0 + $0x14] ss:$8 sps:$4 sm:$0xff]   ;;  %v3143_v23 = vld [vmem:[%s4172_s0 + $0x10] ss:$8 sps:$4 sm:$0xff]  }
   0xa   :  { %186 = vmatpush1.bf16.msra.mxu0 %v3128_v3  ;;  %421 = vmatpush1.bf16.msra.mxu1 %v3149_v11 }
   0xb   :  { %187 = vmatprep.subr.bf16.mxu0 %v3384_v1  ;;  %422 = vmatprep.subr.bf16.mxu1 %v3150_v12 }
   0xe   :  { %188 = vmatpush1.bf16.msra.mxu0 %v3129_v4  ;;  %423 = vmatpush1.bf16.msra.mxu1 %v3152_v14 }
   0xf   :  { %189 = vmatprep.subr.bf16.mxu0 %v3384_v1  ;;  %424 = vmatprep.subr.bf16.mxu1 %v3153_v15 }
  0x12   :  { %190 = vmatpush1.bf16.msra.mxu0 %v3130_v6 }
  0x13   :  { %191 = vmatprep.subr.bf16.mxu0 %v3384_v1 }
  0x16   :  { %192 = vmatpush1.bf16.msra.mxu0 %v3131_v10 }
  0x17   :  { %193 = vmatprep.subr.bf16.mxu0 %v3384_v1 }
  0x1a   :  { %194 = vmatpush1.bf16.msra.mxu0 %v3132_v13 }
  0x1b   :  { %195 = vmatprep.subr.bf16.mxu0 %v3384_v1 }
  0x1e   :  { %196 = vmatpush1.bf16.msra.mxu0 %v3133_v16 }
  0x1f   :  { %197 = vmatprep.subr.bf16.mxu0 %v3384_v1 }
  0x22   :  { %198 = vmatpush1.bf16.msra.mxu0 %v3134_v17 }
  0x23   :  { %199 = vmatprep.subr.bf16.mxu0 %v3384_v1 }
  0x26   :  { %200 = vmatpush1.bf16.msra.mxu0 %v3135_v18 }
  0x27   :  { %201 = vmatprep.subr.bf16.mxu0 %v3384_v1 }
  0x2a   :  { %202 = vmatpush1.bf16.msra.mxu0 %v3136_v19 }
  0x2b   :  { %203 = vmatprep.subr.bf16.mxu0 %v3384_v1 }
  0x2e   :  { %204 = vmatpush1.bf16.msra.mxu0 %v3137_v20 }
  0x31   :  { %214 = vmatmul.mubr.bf16.vlgmr.msra.gmra.mrb[0].mxu0 %v3138_v21 }
  0x32   :  { %2658 = vmatprep.mubr.msk.bf16.mxu0 %vm174_vm0, %v3141_v22 }
  0x39   :  { %222 = vmatmul.mubr.bf16.gmra.mrb[4].mxu0 %v3143_v23 }
  0x3a   :  { %19 = vsyncpa [#allocation3], 0  ;;  %v3155_v24 = vld [vmem:[%s4176_s4 + $0x48] ss:$12 sps:$4 sm:$0xff]   ;;  %v3156_v25 = vld [vmem:[%s4176_s4 + $0x64] ss:$12 sps:$4 sm:$0xff]   ;;  %v275_v3 = vlaneseq }
  0x3b   :  { %425 = vmatpush1.bf16.msra.mxu1 %v3155_v24  ;;  %v3158_v26 = vld [vmem:[%s4176_s4 + $0x60] ss:$12 sps:$4 sm:$0xff]   ;;  %v3159_v27 = vld [vmem:[%s4176_s4 + $0x7c] ss:$12 sps:$4 sm:$0xff]   ;;  %v3161_v28 = vld [vmem:[%s4176_s4 + $0x78] ss:$12 sps:$4 sm:$0xff]  }
  0x3c   :  { %426 = vmatprep.subr.bf16.mxu1 %v3156_v25  ;;  %v3162_v29 = vld [vmem:[%s4176_s4 + $0x94] ss:$12 sps:$4 sm:$0xff]   ;;  %v3164_v30 = vld [vmem:[%s4176_s4 + $0x90] ss:$12 sps:$4 sm:$0xff]   ;;  %v3165_v31 = vld [vmem:[%s4176_s4 + $0xac] ss:$12 sps:$4 sm:$0xff]  }
  0x3d   :  { %v3167_v32 = vld [vmem:[%s4176_s4 + $0xa8] ss:$12 sps:$4 sm:$0xff]   ;;  %v2640_v34 = vld [vmem:[%s4175_s3] ss:$0 sm:$0xff]  ;;  %v3170_v55 = vld [vmem:[%s4176_s4 + $0x38] ss:$12 sps:$4 sm:$0xff]  }
  0x3e   :  { %v3168_v33 = vld [vmem:[%s4176_s4 + $0x8] ss:$12 sps:$4 sm:$0xff]   ;;  %v234_v48 = vld [vmem:[%s4173_s1] sm:$0xff]  ;;  %v3171_v60 = vld [vmem:[%s4176_s4 + $0x50] ss:$12 sps:$4 sm:$0xff]   ;;  %v3385_v2 = vmov 0.0  }
  0x3f   :  { %427 = vmatpush1.bf16.msra.mxu1 %v3158_v26  ;;  %v3169_v53 = vld [vmem:[%s4176_s4 + $0x20] ss:$12 sps:$4 sm:$0xff]   ;;  %v3172_v61 = vld [vmem:[%s4176_s4 + $0x68] ss:$12 sps:$4 sm:$0xff]   ;;  %v3174_v63 = vld [vmem:[%s4176_s4 + $0x98] ss:$12 sps:$4 sm:$0xff]   ;;  %3004 = vmatprep.subr.bf16.mxu0 %v3385_v2 }
  0x40   :  { %428 = vmatprep.subr.bf16.mxu1 %v3159_v27  ;;  %v3173_v62 = vld [vmem:[%s4176_s4 + $0x80] ss:$12 sps:$4 sm:$0xff]   ;;  %v3175_v0 = vld [vmem:[%s4176_s4 + $0xb0] ss:$12 sps:$4 sm:$0xff]   ;;  %vm3386_vm1 = vmmov 0   ;;  %v3625_v4 = vshrl.u32 %v275_v3, 7 }
  0x41   :  { %3006 = vmatprep.mubr.msk.bf16.mxu0 %vm3386_vm1, %v3385_v2  ;;  %v273_v6 = vld [vmem:[%s4177_s5] sm:$0x7]  ;;  %vm744_vm2 = vcmask 1043456   ;;  %vm688_vm3 = vcmask 64512  }
  0x42   :  { %v3628_v5 = vsub.s32 1, %v3625_v4  ;;  %v3635_v8 = vsub.s32 0, %v3625_v4 }
  0x43   :  { %429 = vmatpush1.bf16.msra.mxu1 %v3161_v28 }
  0x44   :  { %430 = vmatprep.subr.bf16.mxu1 %v3162_v29  ;;  %v282_v7 = vrot.slane %v273_v6, %v3628_v5  ;;  %v278_v13 = vrot.slane %v273_v6, %v3635_v8 }
  0x47   :  { %431 = vmatpush1.bf16.msra.mxu1 %v3164_v30 }
  0x48   :  { %432 = vmatprep.subr.bf16.mxu1 %v3165_v31 }
  0x4b   :  { %433 = vmatpush1.bf16.msra.mxu1 %v3167_v32 }
  0x4c   :  { %2984 = vmatprep.subr.bf16.mxu1 %v3168_v33 }
 0x104   :  { %v215_v35 = vpop.f32.mrb[0].mxu0 }
 0x105   :  { %v216_v36 = vadd.f32 %v2640_v34, %v215_v35  ;;  %v217_v37 = vpop.f32.mrb[1].mxu0 }
 0x106   :  { %v218_v38 = vpop.f32.mrb[2].mxu0 }
 0x107   :  { %3288 = vtanh.f32 %v216_v36  ;;  %v219_v39 = vadd.f32 %v2640_v34, %v218_v38  ;;  %v220_v40 = vpop.f32.mrb[3].mxu0 }
 0x109   :  { %3290 = vtanh.f32 %v219_v39 }
 0x10c   :  { %v223_v41 = vpop.f32.mrb[4].mxu0 }
 0x10d   :  { %v224_v42 = vadd.f32 %v2640_v34, %v223_v41  ;;  %v225_v43 = vpop.f32.mrb[5].mxu0 }
 0x10e   :  { %v226_v44 = vpop.f32.mrb[6].mxu0 }
 0x10f   :  { %3292 = vtanh.f32 %v224_v42  ;;  %v227_v45 = vadd.f32 %v2640_v34, %v226_v44  ;;  %v228_v46 = vpop.f32.mrb[7].mxu0 }
 0x111   :  { %v3289_v47 = vpop.eup %3288  ;;  %3294 = vtanh.f32 %v227_v45 }
 0x112   :  { %v3585_v50 = vadd.f32 %v3289_v47, %v234_v48 }
 0x113   :  { %v3291_v49 = vpop.eup %3290 }
 0x114   :  { %v3587_v51 = vadd.f32 %v3291_v49, %v234_v48 }
 0x116   :  { %v239_v52 = vpack.c.bf16 %v3587_v51, %v3585_v50 }
 0x118   :  { %451 = vmatmul.mubr.bf16.vlgmr.msra.gmra.mrb[0].mxu1 %v239_v52 }
 0x119   :  { %v3293_v54 = vpop.eup %3292  ;;  %2985 = vmatpush3.bf16.msra.mxu1 %v3168_v33  ;;  %460 = vmatprep.mubr.bf16.mxu1 %v3384_v1  ;;  %v285_v33 = vsub.s32 2, %v3625_v4 }
 0x11a   :  { %2986 = vmatprep.subr.bf16.mxu1 %v3169_v53  ;;  %v3598_v56 = vadd.f32 %v3293_v54, %v234_v48 }
 0x11b   :  { %v3295_v57 = vpop.eup %3294  ;;  %v286_v35 = vrot.slane %v273_v6, %v285_v33 }
 0x11c   :  { %v3600_v58 = vadd.f32 %v3295_v57, %v234_v48 }
 0x11d   :  { %2987 = vmatpush3.bf16.msra.mxu1 %v3169_v53 }
 0x11e   :  { %2988 = vmatprep.subr.bf16.mxu1 %v3170_v55  ;;  %v240_v59 = vpack.c.bf16 %v3600_v58, %v3598_v56 }
 0x120   :  { %461 = vmatmul.mubr.bf16.gmra.mrb[4].mxu1 %v240_v59 }
 0x121   :  { %2989 = vmatpush3.bf16.msra.mxu1 %v3170_v55  ;;  %3000 = vmatprep.mubr.bf16.mxu1 %v239_v52 }
 0x122   :  { %2990 = vmatprep.subr.bf16.mxu1 %v3171_v60 }
 0x125   :  { %2991 = vmatpush3.bf16.msra.mxu1 %v3171_v60 }
 0x126   :  { %2992 = vmatprep.subr.bf16.mxu1 %v3172_v61 }
 0x129   :  { %2993 = vmatpush3.bf16.msra.mxu1 %v3172_v61 }
 0x12a   :  { %2994 = vmatprep.subr.bf16.mxu1 %v3173_v62 }
 0x12d   :  { %2995 = vmatpush3.bf16.msra.mxu1 %v3173_v62 }
 0x12e   :  { %2996 = vmatprep.subr.bf16.mxu1 %v3174_v63 }
 0x131   :  { %2997 = vmatpush3.bf16.msra.mxu1 %v3174_v63 }
 0x132   :  { %2998 = vmatprep.subr.bf16.mxu1 %v3175_v0 }
 0x135   :  { %2999 = vmatpush3.bf16.msra.mxu1 %v3175_v0 }
 0x136   :  { %3016 = vmatprep.subr.bf16.mxu1 %v3385_v2 }
 0x138   :  { %3001 = vmatmul.mubr.bf16.vlgmr.msra.gmra.mrb[8].mxu1 %v240_v59 }
 0x139   :  { %3018 = vmatprep.mubr.msk.bf16.mxu1 %vm3386_vm1, %v3385_v2 }
 0x1eb   :  { %v452_v9 = vpop.f32.mrb[0].mxu1 }
 0x1ec   :  { %v454_v10 = vpop.f32.mrb[1].mxu1  ;;  %v453_v16 = vadd.f32 %v452_v9, %v278_v13 }
 0x1ed   :  { %v455_v11 = vadd.f32 %v454_v10, %v282_v7  ;;  %v456_v12 = vpop.f32.mrb[2].mxu1 }
 0x1ee   :  { %v458_v14 = vpop.f32.mrb[3].mxu1  ;;  %v520_v22 = vpack.c.bf16 %v453_v16, %v453_v16  ;;  %v457_v26 = vadd.f32 %v456_v12, %v278_v13 }
 0x1ef   :  { %v524_v15 = vpack.c.bf16 %v455_v11, %v455_v11  ;;  %v459_v17 = vadd.f32 %v458_v14, %v282_v7 }
 0x1f0   :  { %v521_v29 = vpack.c.bf16 %v457_v26, %v457_v26 }
 0x1f1   :  { %3005 = vmatpush3.bf16.xpose.msra.mxu0 %v524_v15  ;;  %v525_v24 = vpack.c.bf16 %v459_v17, %v459_v17 }
 0x1f2   :  { %3010 = vmatprep.subr.bf16.mxu0 %v3385_v2 }
 0x1f3   :  { %v462_v18 = vpop.f32.mrb[4].mxu1 }
 0x1f4   :  { %v464_v19 = vpop.f32.mrb[5].mxu1  ;;  %v463_v27 = vadd.f32 %v462_v18, %v278_v13 }
 0x1f5   :  { %v465_v20 = vadd.f32 %v464_v19, %v282_v7  ;;  %v466_v21 = vpop.f32.mrb[6].mxu1 }
 0x1f6   :  { %v468_v23 = vpop.f32.mrb[7].mxu1  ;;  %v522_v30 = vpack.c.bf16 %v463_v27, %v463_v27  ;;  %v467_v32 = vadd.f32 %v466_v21, %v278_v13 }
 0x1f7   :  { %v526_v25 = vpack.c.bf16 %v465_v20, %v465_v20  ;;  %v469_v28 = vadd.f32 %v468_v23, %v282_v7 }
 0x1f8   :  { %3007 = vmatmul.mubr.bf16.vlgmr.msra.gmra.mrb[8].mxu0 %v520_v22  ;;  %v523_v34 = vpack.c.bf16 %v467_v32, %v467_v32 }
 0x1f9   :  { %3011 = vmatpush3.bf16.xpose.msra.mxu0 %v525_v24  ;;  %3017 = vmatpush3.bf16.xpose.msra.mxu1 %v526_v25  ;;  %v527_v31 = vpack.c.bf16 %v469_v28, %v469_v28 }
 0x1fa   :  { %3012 = vmatprep.mubr.msk.bf16.mxu0 %vm3386_vm1, %v3385_v2  ;;  %3022 = vmatprep.subr.bf16.mxu0 %v3385_v2 }
 0x1fb   :  { %3028 = vmatprep.subr.bf16.mxu1 %v3385_v2 }
 0x200   :  { %3013 = vmatmul.mubr.bf16.vlgmr.msra.gmra.mrb[12].mxu0 %v521_v29  ;;  %3019 = vmatmul.mubr.bf16.vlgmr.msra.gmra.mrb[12].mxu1 %v522_v30 }
 0x201   :  { %3023 = vmatpush3.bf16.xpose.msra.mxu0 %v527_v31  ;;  %3024 = vmatprep.mubr.msk.bf16.mxu0 %vm3386_vm1, %v3385_v2 }
 0x202   :  { %3034 = vmatprep.subr.bf16.mxu0 %v3385_v2  ;;  %3030 = vmatprep.mubr.msk.bf16.mxu1 %vm3386_vm1, %v3385_v2 }
 0x208   :  { %3025 = vmatmul.mubr.bf16.vlgmr.msra.gmra.mrb[16].mxu0 %v523_v34 }
 0x209   :  { %3036 = vmatprep.mubr.msk.bf16.mxu0 %vm3386_vm1, %v3385_v2 }
 0x20b   :  { %v3002_v36 = vpop.f32.mrb[8].mxu1 }
 0x20c   :  { %v3653_v37 = vadd.f32 %v3002_v36, %v286_v35  ;;  %v505_v38 = vpop.f32.mrb[9].mxu1 }
 0x20d   :  { %v506_v39 = vadd.f32 %v505_v38, %v286_v35  ;;  %v3003_v40 = vpop.f32.mrb[10].mxu1 }
 0x20e   :  { %v3655_v41 = vadd.f32 %v3003_v40, %v286_v35  ;;  %v508_v42 = vpop.f32.mrb[11].mxu1 }
 0x20f   :  { %v737_v43 = vpack.c.bf16 %v506_v39, %v506_v39  ;;  %v509_v44 = vadd.f32 %v508_v42, %v286_v35  ;;  %v739_v39 = vpack.c.bf16 %v3653_v37, %v3653_v37 }
 0x211   :  { %v746_v45 = vsel %vm744_vm2, %v737_v43, 0  ;;  %v738_v46 = vpack.c.bf16 %v509_v44, %v509_v44  ;;  %v838_v43 = vsel %vm744_vm2, %v739_v39, 0  ;;  %v3187_v39 = vld [vmem:[%s4180_s8 + $0x34] ss:$8 sps:$4 sm:$0xff]  }
 0x212   :  { %3029 = vmatpush3.bf16.msra.mxu1 %v746_v45 }
 0x213   :  { %v792_v47 = vsel %vm744_vm2, %v738_v46, 0  ;;  %3040 = vmatprep.subr.bf16.mxu1 %v3385_v2 }
 0x214   :  { %3035 = vmatpush3.bf16.msra.mxu0 %v792_v47 }
 0x215   :  { %3046 = vmatprep.subr.bf16.mxu0 %v3385_v2 }
 0x2cb   :  { %v562_v48 = vpop.f32.mrb[8].mxu0 }
 0x2cc   :  { %v3008_v49 = vpop.f32.mrb[9].mxu0  ;;  %v689_v52 = vsel %vm688_vm3, %v562_v48, -inf }
 0x2cd   :  { %690 = vmax.xlane.f32.xlu0 %v689_v52  ;;  %v565_v53 = vpop.f32.mrb[10].mxu0 }
 0x2ce   :  { %v3009_v54 = vpop.f32.mrb[11].mxu0 }
 0x2d3   :  { %v602_v55 = vpop.f32.mrb[12].mxu0  ;;  %v642_v57 = vpop.f32.mrb[12].mxu1 }
 0x2d4   :  { %v3014_v59 = vpop.f32.mrb[13].mxu0  ;;  %v3020_v60 = vpop.f32.mrb[13].mxu1  ;;  %v695_v61 = vsel %vm688_vm3, %v642_v57, -inf  ;;  %v692_v62 = vsel %vm688_vm3, %v602_v55, -inf }
 0x2d5   :  { %696 = vmax.xlane.f32.xlu1 %v695_v61  ;;  %v645_v63 = vpop.f32.mrb[14].mxu1  ;;  %693 = vmax.xlane.f32.xlu0 %v692_v62  ;;  %v605_v0 = vpop.f32.mrb[14].mxu0 }
 0x2d6   :  { %v3015_v3 = vpop.f32.mrb[15].mxu0  ;;  %v3021_v6 = vpop.f32.mrb[15].mxu1 }
 0x2db   :  { %v682_v7 = vpop.f32.mrb[16].mxu0 }
 0x2dc   :  { %v3026_v9 = vpop.f32.mrb[17].mxu0  ;;  %v698_v10 = vsel %vm688_vm3, %v682_v7, -inf }
 0x2dd   :  { %699 = vmax.xlane.f32.xlu1 %v698_v10  ;;  %v685_v11 = vpop.f32.mrb[18].mxu0 }
 0x2de   :  { %v3027_v12 = vpop.f32.mrb[19].mxu0 }
 0x35a   :  { %v691_v13 = vpop.xlane.xlu0 %690 }
 0x35b   :  { %v701_v14 = vsub.f32 %v562_v48, %v691_v13  ;;  %v740_v48 = vpack.c.bf16 %v3655_v41, %v3655_v41 }
 0x35d   :  { %v705_v15 = vmul.f32 1.442695, %v701_v14  ;;  %v884_v53 = vsel %vm744_vm2, %v740_v48, 0  ;;  %v3199_v48 = vld [vmem:[%s4180_s8 + $0x74] ss:$8 sps:$4 sm:$0xff]  }
 0x35f   :  { %3296 = vpow2.f32 %v705_v15 }
 0x362   :  { %v697_v16 = vpop.xlane.xlu1 %696  ;;  %v694_v17 = vpop.xlane.xlu0 %693 }
 0x363   :  { %v703_v18 = vsub.f32 %v642_v57, %v697_v16  ;;  %v702_v19 = vsub.f32 %v602_v55, %v694_v17 }
 0x365   :  { %v709_v20 = vmul.f32 1.442695, %v703_v18  ;;  %v707_v21 = vmul.f32 1.442695, %v702_v19 }
 0x367   :  { %3298 = vpow2.f32 %v709_v20 }
 0x368   :  { %3300 = vpow2.f32 %v707_v21 }
 0x369   :  { %v3297_v22 = vpop.eup %3296 }
 0x36a   :  { %v700_v23 = vpop.xlane.xlu1 %699  ;;  %v713_v24 = vsel %vm688_vm3, %v3297_v22, 0.0 }
 0x36b   :  { %v704_v25 = vsub.f32 %v682_v7, %v700_v23  ;;  %714 = vadd.xlane.f32.xlu0 %v713_v24 }
 0x36d   :  { %v711_v26 = vmul.f32 1.442695, %v704_v25 }
 0x36f   :  { %3302 = vpow2.f32 %v711_v26 }
 0x371   :  { %v3299_v27 = vpop.eup %3298 }
 0x372   :  { %v3301_v28 = vpop.eup %3300  ;;  %v719_v29 = vsel %vm688_vm3, %v3299_v27, 0.0 }
 0x373   :  { %720 = vadd.xlane.f32.xlu0 %v719_v29  ;;  %v716_v30 = vsel %vm688_vm3, %v3301_v28, 0.0 }
 0x374   :  { %717 = vadd.xlane.f32.xlu1 %v716_v30 }
 0x379   :  { %v3303_v31 = vpop.eup %3302 }
 0x37a   :  { %v722_v32 = vsel %vm688_vm3, %v3303_v31, 0.0 }
 0x37b   :  { %723 = vadd.xlane.f32.xlu1 %v722_v32 }
 0x3f8   :  { %v715_v34 = vpop.xlane.xlu0 %714 }
 0x3f9   :  { %3304 = vrcp.f32 %v715_v34  ;;  %v3181_v34 = vld [vmem:[%s4180_s8 + $0x14] ss:$8 sps:$4 sm:$0xff]  }
 0x400   :  { %v721_v35 = vpop.xlane.xlu0 %720 }
 0x401   :  { %3306 = vrcp.f32 %v721_v35  ;;  %v718_v36 = vpop.xlane.xlu1 %717  ;;  %v3179_v35 = vld [vmem:[%s4180_s8 + $0x10] ss:$8 sps:$4 sm:$0xff]  }
 0x402   :  { %3308 = vrcp.f32 %v718_v36  ;;  %v3184_v36 = vld [vmem:[%s4180_s8 + $0x24] ss:$8 sps:$4 sm:$0xff]  }
 0x403   :  { %v3305_v38 = vpop.eup %3304 }
 0x404   :  { %v729_v40 = vmul.f32 %v3305_v38, %v3297_v22  ;;  %v3182_v38 = vld [vmem:[%s4180_s8 + $0x20] ss:$8 sps:$4 sm:$0xff]  }
 0x406   :  { %v733_v42 = vpack.c.bf16 %v729_v40, %v729_v40  ;;  %v3185_v40 = vld [vmem:[%s4180_s8 + $0x30] ss:$8 sps:$4 sm:$0xff]  }
 0x408   :  { %3031 = vmatmul.mubr.msk.bf16.vlgmr.msra.gmra.mrb[16].mxu1 %vm688_vm3, %v733_v42  ;;  %v724_v44 = vpop.xlane.xlu1 %723  ;;  %v3190_v42 = vld [vmem:[%s4180_s8 + $0x44] ss:$8 sps:$4 sm:$0xff]  }
 0x409   :  { %3041 = vmatpush3.bf16.msra.mxu1 %v838_v43  ;;  %3310 = vrcp.f32 %v724_v44  ;;  %3042 = vmatprep.mubr.msk.bf16.mxu1 %vm3386_vm1, %v3385_v2  ;;  %v3188_v43 = vld [vmem:[%s4180_s8 + $0x40] ss:$8 sps:$4 sm:$0xff]   ;;  %v3193_v44 = vld [vmem:[%s4180_s8 + $0x54] ss:$8 sps:$4 sm:$0xff]  }
 0x40b   :  { %v3307_v45 = vpop.eup %3306 }
 0x40c   :  { %v3309_v46 = vpop.eup %3308  ;;  %v731_v47 = vmul.f32 %v3307_v45, %v3299_v27  ;;  %v3191_v45 = vld [vmem:[%s4180_s8 + $0x50] ss:$8 sps:$4 sm:$0xff]  }
 0x40d   :  { %v730_v49 = vmul.f32 %v3309_v46, %v3301_v28  ;;  %v3196_v46 = vld [vmem:[%s4180_s8 + $0x64] ss:$8 sps:$4 sm:$0xff]  }
 0x40e   :  { %v735_v37 = vpack.c.bf16 %v731_v47, %v731_v47  ;;  %v3194_v47 = vld [vmem:[%s4180_s8 + $0x60] ss:$8 sps:$4 sm:$0xff]  }
 0x40f   :  { %v734_v52 = vpack.c.bf16 %v730_v49, %v730_v49  ;;  %v3197_v49 = vld [vmem:[%s4180_s8 + $0x70] ss:$8 sps:$4 sm:$0xff]  }
 0x410   :  { %3043 = vmatmul.mubr.msk.bf16.vlgmr.msra.gmra.mrb[20].mxu1 %vm688_vm3, %v735_v37  ;;  %v3200_v37 = vld [vmem:[%s4182_s10 + $0x40] sm:$0xff]  }
 0x411   :  { %3037 = vmatmul.mubr.msk.bf16.vlgmr.msra.gmra.mrb[20].mxu0 %vm688_vm3, %v734_v52  ;;  %1139 = vmatprep.mubr.bf16.mxu1 %v3384_v1  ;;  %v3201_v52 = vld [vmem:[%s4182_s10] sm:$0xff]  }
 0x412   :  { %3047 = vmatpush3.bf16.msra.mxu0 %v884_v53  ;;  %3048 = vmatprep.mubr.msk.bf16.mxu0 %vm3386_vm1, %v3385_v2  ;;  %v3202_v53 = vld [vmem:[%s4182_s10 + $0x48] sm:$0xff]  }
 0x413   :  { %v3311_v54 = vpop.eup %3310  ;;  %2902 = vmatprep.subr.bf16.mxu0 %v3200_v37 }
 0x414   :  { %v732_v55 = vmul.f32 %v3311_v54, %v3303_v31  ;;  %v3203_v54 = vld [vmem:[%s4182_s10 + $0x8] sm:$0xff]  }
 0x416   :  { %v736_v57 = vpack.c.bf16 %v732_v55, %v732_v55  ;;  %v3204_v55 = vld [vmem:[%s4182_s10 + $0x50] sm:$0xff]  }
 0x419   :  { %3049 = vmatmul.mubr.msk.bf16.vlgmr.msra.gmra.mrb[24].mxu0 %vm688_vm3, %v736_v57  ;;  %v3205_v57 = vld [vmem:[%s4182_s10 + $0x10] sm:$0xff]  }
 0x41a   :  { %2903 = vmatpush3.bf16.msra.mxu0 %v3201_v52 }
 0x41b   :  { %2904 = vmatprep.subr.bf16.mxu0 %v3202_v53 }
 0x41e   :  { %2905 = vmatpush3.bf16.msra.mxu0 %v3203_v54 }
 0x41f   :  { %2906 = vmatprep.subr.bf16.mxu0 %v3204_v55 }
 0x422   :  { %2907 = vmatpush3.bf16.msra.mxu0 %v3205_v57 }
 0x4db   :  { %v782_v41 = vpop.f32.mrb[16].mxu1 }
 0x4dc   :  { %v926_v59 = vadd.f32 %v782_v41, %v3585_v50  ;;  %v3032_v60 = vpop.f32.mrb[17].mxu1  ;;  %v3206_v41 = vld [vmem:[%s4182_s10 + $0x58] sm:$0xff]  }
 0x4dd   :  { %v785_v61 = vpop.f32.mrb[18].mxu1  ;;  %2908 = vmatprep.subr.bf16.mxu0 %v3206_v41  ;;  %v3208_v60 = vld [vmem:[%s4182_s10 + $0x60] sm:$0xff]  }
 0x4de   :  { %932 = vadd.xlane.f32.xlu0 %v926_v59  ;;  %v3033_v62 = vpop.f32.mrb[19].mxu1  ;;  %v3209_v61 = vld [vmem:[%s4182_s10 + $0x20] sm:$0xff]  }
 0x4df   :  { %v3210_v62 = vld [vmem:[%s4182_s10 + $0x68] sm:$0xff]  }
 0x4e3   :  { %v874_v63 = vpop.f32.mrb[20].mxu1 }
 0x4e4   :  { %v828_v0 = vpop.f32.mrb[20].mxu0  ;;  %v928_v3 = vadd.f32 %v874_v63, %v3598_v56  ;;  %v3044_v6 = vpop.f32.mrb[21].mxu1  ;;  %v3176_v56 = vld [vmem:[%s4180_s8] ss:$8 sps:$4 sm:$0xff]  }
 0x4e5   :  { %v927_v7 = vadd.f32 %v828_v0, %v3587_v51  ;;  %v3038_v9 = vpop.f32.mrb[21].mxu0  ;;  %v877_v10 = vpop.f32.mrb[22].mxu1  ;;  %v3178_v51 = vld [vmem:[%s4180_s8 + $0x4] ss:$8 sps:$4 sm:$0xff]  }
 0x4e6   :  { %v831_v11 = vpop.f32.mrb[22].mxu0  ;;  %936 = vadd.xlane.f32.xlu0 %v928_v3  ;;  %v3045_v12 = vpop.f32.mrb[23].mxu1  ;;  %1107 = vmatprep.subr.bf16.mxu1 %v3178_v51 }
 0x4e7   :  { %934 = vadd.xlane.f32.xlu1 %v927_v7  ;;  %v3039_v13 = vpop.f32.mrb[23].mxu0  ;;  %1108 = vmatpush1.bf16.msra.mxu1 %v3176_v56 }
 0x4e8   :  { %1109 = vmatprep.subr.bf16.mxu1 %v3181_v34 }
 0x4eb   :  { %1110 = vmatpush1.bf16.msra.mxu1 %v3179_v35  ;;  %v3213_v35 = vld [vmem:[%s4182_s10 + $0x30] sm:$0xff]  }
 0x4ec   :  { %v920_v14 = vpop.f32.mrb[24].mxu0  ;;  %1111 = vmatprep.subr.bf16.mxu1 %v3184_v36  ;;  %v3214_v36 = vld [vmem:[%s4182_s10 + $0x78] sm:$0xff]  }
 0x4ed   :  { %v929_v50 = vadd.f32 %v920_v14, %v3600_v58  ;;  %v3050_v15 = vpop.f32.mrb[25].mxu0 }
 0x4ee   :  { %v923_v16 = vpop.f32.mrb[26].mxu0 }
 0x4ef   :  { %938 = vadd.xlane.f32.xlu1 %v929_v50  ;;  %v3051_v17 = vpop.f32.mrb[27].mxu0  ;;  %1112 = vmatpush1.bf16.msra.mxu1 %v3182_v38  ;;  %v3215_v38 = vld [vmem:[%s4182_s10 + $0x38] sm:$0xff]  }
 0x4f0   :  { %1113 = vmatprep.subr.bf16.mxu1 %v3187_v39  ;;  %v2687_v17 = vld [vmem:[%s4178_s6] ss:$0 sm:$0xff] }
 0x4f1   :  { %v1015_v39 = vld [vmem:[%s4181_s9] sm:$0x3] }
 0x4f3   :  { %1114 = vmatpush1.bf16.msra.mxu1 %v3185_v40  ;;  %v1020_v40 = vrot.slane %v1015_v39, %v3635_v8 }
 0x4f4   :  { %1115 = vmatprep.subr.bf16.mxu1 %v3190_v42  ;;  %v1024_v42 = vrot.slane %v1015_v39, %v3628_v5 }
 0x4f7   :  { %1116 = vmatpush1.bf16.msra.mxu1 %v3188_v43 }
 0x4f8   :  { %1117 = vmatprep.subr.bf16.mxu1 %v3193_v44 }
 0x4fb   :  { %1118 = vmatpush1.bf16.msra.mxu1 %v3191_v45 }
 0x4fc   :  { %1119 = vmatprep.subr.bf16.mxu1 %v3196_v46 }
 0x4ff   :  { %1120 = vmatpush1.bf16.msra.mxu1 %v3194_v47 }
 0x500   :  { %1121 = vmatprep.subr.bf16.mxu1 %v3199_v48 }
 0x503   :  { %1122 = vmatpush1.bf16.msra.mxu1 %v3197_v49 }
 0x56b   :  { %v933_v18 = vpop.xlane.xlu0 %932 }
 0x56c   :  { %v941_v19 = vmul.f32 0.0078125, %v933_v18 }
 0x56e   :  { %v3694_v20 = vsub.f32 %v926_v59, %v941_v19  ;;  %v3207_v59 = vld [vmem:[%s4182_s10 + $0x18] sm:$0xff]  }
 0x56f   :  { %2909 = vmatpush3.bf16.msra.mxu0 %v3207_v59 }
 0x570   :  { %v949_v58 = vmul.f32 %v3694_v20, %v3694_v20  ;;  %2910 = vmatprep.subr.bf16.mxu0 %v3208_v60 }
 0x572   :  { %953 = vadd.xlane.f32.xlu0 %v949_v58  ;;  %v2688_v58 = vld [vmem:[%s4179_s7] ss:$0 sm:$0xff] }
 0x573   :  { %v937_v21 = vpop.xlane.xlu0 %936  ;;  %2911 = vmatpush3.bf16.msra.mxu0 %v3209_v61 }
 0x574   :  { %v943_v22 = vmul.f32 0.0078125, %v937_v21  ;;  %v935_v23 = vpop.xlane.xlu1 %934  ;;  %2912 = vmatprep.subr.bf16.mxu0 %v3210_v62 }
 0x575   :  { %v942_v24 = vmul.f32 0.0078125, %v935_v23 }
 0x576   :  { %v3698_v25 = vsub.f32 %v928_v3, %v943_v22 }
 0x577   :  { %v3700_v26 = vsub.f32 %v927_v7, %v942_v24 }
 0x578   :  { %v951_v27 = vmul.f32 %v3698_v25, %v3698_v25 }
 0x579   :  { %v950_v28 = vmul.f32 %v3700_v26, %v3700_v26 }
 0x57a   :  { %957 = vadd.xlane.f32.xlu0 %v951_v27 }
 0x57b   :  { %955 = vadd.xlane.f32.xlu1 %v950_v28 }
 0x57c   :  { %v939_v29 = vpop.xlane.xlu1 %938 }
 0x57d   :  { %v944_v30 = vmul.f32 0.0078125, %v939_v29 }
 0x57f   :  { %v3706_v31 = vsub.f32 %v929_v50, %v944_v30 }
 0x581   :  { %v952_v32 = vmul.f32 %v3706_v31, %v3706_v31 }
 0x583   :  { %959 = vadd.xlane.f32.xlu1 %v952_v32 }
 0x5ff   :  { %v954_v63 = vpop.xlane.xlu0 %953 }
 0x600   :  { %v961_v0 = vmul.f32 0.0078125, %v954_v63 }
 0x602   :  { %v965_v3 = vadd.f32 1e-05, %v961_v0 }
 0x604   :  { %3312 = vrsqrt.f32 %v965_v3 }
 0x607   :  { %v958_v6 = vpop.xlane.xlu0 %957 }
 0x608   :  { %v963_v7 = vmul.f32 0.0078125, %v958_v6  ;;  %v956_v9 = vpop.xlane.xlu1 %955 }
 0x609   :  { %v962_v10 = vmul.f32 0.0078125, %v956_v9 }
 0x60a   :  { %v967_v11 = vadd.f32 1e-05, %v963_v7 }
 0x60b   :  { %v966_v12 = vadd.f32 1e-05, %v962_v10 }
 0x60d   :  { %3314 = vrsqrt.f32 %v966_v12 }
 0x60e   :  { %3316 = vrsqrt.f32 %v967_v11  ;;  %v3313_v14 = vpop.eup %3312 }
 0x60f   :  { %v973_v16 = vmul.f32 %v3313_v14, %v3694_v20 }
 0x610   :  { %v960_v13 = vpop.xlane.xlu1 %959 }
 0x611   :  { %v964_v50 = vmul.f32 0.0078125, %v960_v13  ;;  %v983_v18 = vmul.f32 %v2687_v17, %v973_v16 }
 0x613   :  { %v968_v15 = vadd.f32 1e-05, %v964_v50  ;;  %v3793_v22 = vadd.f32 %v2688_v58, %v983_v18  ;;  %v2705_v50 = vld [vmem:[%s4183_s11] ss:$0 sm:$0xff] }
 0x615   :  { %3318 = vrsqrt.f32 %v968_v15 }
 0x617   :  { %v3315_v56 = vpop.eup %3314 }
 0x618   :  { %v974_v51 = vmul.f32 %v3315_v56, %v3700_v26  ;;  %v3317_v19 = vpop.eup %3316 }
 0x619   :  { %v975_v20 = vmul.f32 %v3317_v19, %v3698_v25  ;;  %v3211_v25 = vld [vmem:[%s4182_s10 + $0x28] sm:$0xff]  }
 0x61a   :  { %v984_v21 = vmul.f32 %v2687_v17, %v974_v51  ;;  %2913 = vmatpush3.bf16.msra.mxu0 %v3211_v25 }
 0x61b   :  { %v985_v28 = vmul.f32 %v2687_v17, %v975_v20 }
 0x61c   :  { %v3795_v23 = vadd.f32 %v2688_v58, %v984_v21 }
 0x61d   :  { %v3802_v30 = vadd.f32 %v2688_v58, %v985_v28 }
 0x61e   :  { %v997_v24 = vpack.c.bf16 %v3795_v23, %v3793_v22 }
 0x61f   :  { %v3319_v27 = vpop.eup %3318 }
 0x620   :  { %1140 = vmatmul.mubr.bf16.vlgmr.msra.gmra.mrb[24].mxu1 %v997_v24  ;;  %v976_v26 = vmul.f32 %v3319_v27, %v3706_v31  ;;  %v3212_v31 = vld [vmem:[%s4182_s10 + $0x70] sm:$0xff]  }
 0x621   :  { %1149 = vmatprep.mubr.bf16.mxu1 %v3384_v1  ;;  %2914 = vmatprep.subr.bf16.mxu0 %v3212_v31 }
 0x622   :  { %v986_v29 = vmul.f32 %v2687_v17, %v976_v26  ;;  %2915 = vmatpush3.bf16.msra.mxu0 %v3213_v35 }
 0x623   :  { %2916 = vmatprep.subr.bf16.mxu0 %v3214_v36  ;;  %v3221_v36 = vld [vmem:[%s4176_s4 + $0xdc] ss:$12 sps:$4 sm:$0xff]  }
 0x624   :  { %v3804_v32 = vadd.f32 %v2688_v58, %v986_v29 }
 0x626   :  { %v998_v34 = vpack.c.bf16 %v3804_v32, %v3802_v30  ;;  %2917 = vmatpush3.bf16.msra.mxu0 %v3215_v38 }
 0x628   :  { %1150 = vmatmul.mubr.bf16.gmra.mrb[28].mxu1 %v998_v34 }
 0x629   :  { %1639 = vmatprep.mubr.bf16.mxu1 %v3384_v1 }
 0x6f3   :  { %v1141_v43 = vpop.f32.mrb[24].mxu1 }
 0x6f4   :  { %v1142_v44 = vadd.f32 %v1141_v43, %v1020_v40  ;;  %v1143_v45 = vpop.f32.mrb[25].mxu1 }
 0x6f5   :  { %v1144_v46 = vadd.f32 %v1143_v45, %v1024_v42  ;;  %v1145_v47 = vpop.f32.mrb[26].mxu1 }
 0x6f6   :  { %v1146_v48 = vadd.f32 %v1145_v47, %v1020_v40  ;;  %v1147_v49 = vpop.f32.mrb[27].mxu1  ;;  %v1160_v52 = vmax.f32 %v1142_v44, 0.0 }
 0x6f7   :  { %v1148_v37 = vadd.f32 %v1147_v49, %v1024_v42  ;;  %v1161_v54 = vmax.f32 %v1144_v46, 0.0 }
 0x6f8   :  { %v1162_v53 = vmax.f32 %v1146_v48, 0.0 }
 0x6f9   :  { %v1163_v55 = vmax.f32 %v1148_v37, 0.0 }
 0x6fa   :  { %v1168_v57 = vpack.c.bf16 %v1162_v53, %v1160_v52 }
 0x6fb   :  { %v1169_v41 = vpack.c.bf16 %v1163_v55, %v1161_v54  ;;  %v1151_v59 = vpop.f32.mrb[28].mxu1  ;;  %v3224_v55 = vld [vmem:[%s4176_s4 + $0xf4] ss:$12 sps:$4 sm:$0xff]  }
 0x6fc   :  { %v1152_v60 = vadd.f32 %v1151_v59, %v1020_v40  ;;  %v1153_v61 = vpop.f32.mrb[29].mxu1  ;;  %v3228_v59 = vld [vmem:[%s4176_s4 + $0x10c] ss:$12 sps:$4 sm:$0xff]  }
 0x6fd   :  { %v1154_v62 = vadd.f32 %v1153_v61, %v1024_v42  ;;  %v1155_v63 = vpop.f32.mrb[30].mxu1  ;;  %1339 = vmatprep.mubr.bf16.mxu0 %v1169_v41  ;;  %v3222_v41 = vld [vmem:[%s4176_s4 + $0xf0] ss:$12 sps:$4 sm:$0xff]   ;;  %v3226_v61 = vld [vmem:[%s4176_s4 + $0x108] ss:$12 sps:$4 sm:$0xff]  }
 0x6fe   :  { %v1156_v0 = vadd.f32 %v1155_v63, %v1020_v40  ;;  %v1157_v3 = vpop.f32.mrb[31].mxu1  ;;  %1340 = vmatmul.mubr.bf16.vlgmr.msra.gmra.mrb[28].mxu0 %v1168_v57  ;;  %v1164_v7 = vmax.f32 %v1152_v60, 0.0  ;;  %v3225_v57 = vld [vmem:[%s4176_s4 + $0xc8] ss:$12 sps:$4 sm:$0xff]   ;;  %v3229_v60 = vld [vmem:[%s4176_s4 + $0xe0] ss:$12 sps:$4 sm:$0xff]  }
 0x6ff   :  { %v1158_v6 = vadd.f32 %v1157_v3, %v1024_v42  ;;  %v1165_v10 = vmax.f32 %v1154_v62, 0.0  ;;  %3052 = vmatprep.subr.bf16.mxu0 %v3225_v57  ;;  %v3232_v62 = vld [vmem:[%s4176_s4 + $0x124] ss:$12 sps:$4 sm:$0xff]   ;;  %v3236_v3 = vld [vmem:[%s4176_s4 + $0x13c] ss:$12 sps:$4 sm:$0xff]  }
 0x700   :  { %v1166_v9 = vmax.f32 %v1156_v0, 0.0  ;;  %3053 = vmatpush3.bf16.msra.mxu0 %v3225_v57  ;;  %v3233_v63 = vld [vmem:[%s4176_s4 + $0xf8] ss:$12 sps:$4 sm:$0xff]   ;;  %v3230_v0 = vld [vmem:[%s4176_s4 + $0x120] ss:$12 sps:$4 sm:$0xff]  }
 0x701   :  { %v1167_v11 = vmax.f32 %v1158_v6, 0.0  ;;  %3054 = vmatprep.subr.bf16.mxu0 %v3229_v60  ;;  %v3237_v6 = vld [vmem:[%s4176_s4 + $0x110] ss:$12 sps:$4 sm:$0xff]  }
 0x702   :  { %v1170_v12 = vpack.c.bf16 %v1166_v9, %v1164_v7  ;;  %v3234_v7 = vld [vmem:[%s4176_s4 + $0x138] ss:$12 sps:$4 sm:$0xff]   ;;  %v3240_v9 = vld [vmem:[%s4176_s4 + $0x154] ss:$12 sps:$4 sm:$0xff]  }
 0x703   :  { %v1171_v13 = vpack.c.bf16 %v1167_v11, %v1165_v10  ;;  %v3241_v10 = vld [vmem:[%s4176_s4 + $0x128] ss:$12 sps:$4 sm:$0xff]   ;;  %v3238_v11 = vld [vmem:[%s4176_s4 + $0x150] ss:$12 sps:$4 sm:$0xff]  }
 0x704   :  { %3055 = vmatpush3.bf16.msra.mxu0 %v3229_v60 }
 0x705   :  { %1347 = vmatprep.mubr.bf16.mxu0 %v1171_v13  ;;  %3056 = vmatprep.subr.bf16.mxu0 %v3233_v63  ;;  %v3244_v13 = vld [vmem:[%s4176_s4 + $0x16c] ss:$12 sps:$4 sm:$0xff]  }
 0x706   :  { %1348 = vmatmul.mubr.bf16.gmra.mrb[32].mxu0 %v1170_v12  ;;  %v3242_v12 = vld [vmem:[%s4176_s4 + $0x168] ss:$12 sps:$4 sm:$0xff]  }
 0x708   :  { %3057 = vmatpush3.bf16.msra.mxu0 %v3233_v63 }
 0x709   :  { %3058 = vmatprep.subr.bf16.mxu0 %v3237_v6 }
 0x70c   :  { %3059 = vmatpush3.bf16.msra.mxu0 %v3237_v6 }
 0x70d   :  { %3060 = vmatprep.subr.bf16.mxu0 %v3241_v10 }
 0x710   :  { %3061 = vmatpush3.bf16.msra.mxu0 %v3241_v10 }
 0x7d1   :  { %v2918_v14 = vpop.f32.mrb[28].mxu0 }
 0x7d2   :  { %v2919_v15 = vpop.f32.mrb[29].mxu0 }
 0x7d3   :  { %v2920_v16 = vadd.f32 %v2919_v15, %v2918_v14  ;;  %v2921_v17 = vpop.f32.mrb[30].mxu0  ;;  %v3245_v14 = vld [vmem:[%s4176_s4 + $0x140] ss:$12 sps:$4 sm:$0xff]   ;;  %v3247_v15 = vld [vmem:[%s4176_s4 + $0x170] ss:$12 sps:$4 sm:$0xff]  }
 0x7d4   :  { %v2922_v56 = vpop.f32.mrb[31].mxu0  ;;  %3062 = vmatprep.subr.bf16.mxu0 %v3245_v14 }
 0x7d5   :  { %v1342_v51 = vadd.f32 %v2920_v16, %v2705_v50  ;;  %v2923_v18 = vadd.f32 %v2922_v56, %v2921_v17  ;;  %3063 = vmatpush3.bf16.msra.mxu0 %v3245_v14 }
 0x7d7   :  { %v1345_v19 = vadd.f32 %v2923_v18, %v2705_v50  ;;  %v1356_v58 = vadd.f32 %v1342_v51, %v3793_v22  ;;  %v3216_v22 = vld [vmem:[%s4176_s4 + $0xc0] ss:$12 sps:$4 sm:$0xff]  }
 0x7d9   :  { %v2924_v21 = vpop.f32.mrb[32].mxu0  ;;  %1362 = vadd.xlane.f32.xlu0 %v1356_v58  ;;  %v1357_v20 = vadd.f32 %v1345_v19, %v3795_v23  ;;  %v3218_v23 = vld [vmem:[%s4176_s4 + $0xc4] ss:$12 sps:$4 sm:$0xff]  }
 0x7da   :  { %v2925_v24 = vpop.f32.mrb[33].mxu0  ;;  %1607 = vmatprep.subr.bf16.mxu1 %v3218_v23 }
 0x7db   :  { %v2926_v27 = vadd.f32 %v2925_v24, %v2924_v21  ;;  %v2927_v26 = vpop.f32.mrb[34].mxu0  ;;  %1364 = vadd.xlane.f32.xlu1 %v1357_v20  ;;  %1608 = vmatpush1.bf16.msra.mxu1 %v3216_v22  ;;  %v2723_v22 = vld [vmem:[%s4185_s13] ss:$0 sm:$0xff] }
 0x7dc   :  { %v2928_v28 = vpop.f32.mrb[35].mxu0  ;;  %1609 = vmatprep.subr.bf16.mxu1 %v3221_v36 }
 0x7dd   :  { %v1350_v29 = vadd.f32 %v2926_v27, %v2705_v50  ;;  %v2929_v34 = vadd.f32 %v2928_v28, %v2927_v26 }
 0x7df   :  { %v1353_v25 = vadd.f32 %v2929_v34, %v2705_v50  ;;  %v1358_v31 = vadd.f32 %v1350_v29, %v3802_v30  ;;  %v3219_v30 = vld [vmem:[%s4176_s4 + $0xd8] ss:$12 sps:$4 sm:$0xff]   ;;  %v2722_v29 = vld [vmem:[%s4184_s12] ss:$0 sm:$0xff] }
 0x7e0   :  { %1610 = vmatpush1.bf16.msra.mxu1 %v3219_v30  ;;  %v3246_v50 = vld [vmem:[%s4176_s4 + $0x158] ss:$12 sps:$4 sm:$0xff]  }
 0x7e1   :  { %1366 = vadd.xlane.f32.xlu0 %v1358_v31  ;;  %v1359_v35 = vadd.f32 %v1353_v25, %v3804_v32  ;;  %1611 = vmatprep.subr.bf16.mxu1 %v3224_v55 }
 0x7e2   :  { %3064 = vmatprep.subr.bf16.mxu0 %v3246_v50 }
 0x7e3   :  { %1368 = vadd.xlane.f32.xlu1 %v1359_v35  ;;  %3065 = vmatpush3.bf16.msra.mxu0 %v3246_v50 }
 0x7e4   :  { %1612 = vmatpush1.bf16.msra.mxu1 %v3222_v41  ;;  %3066 = vmatprep.subr.bf16.mxu0 %v3247_v15 }
 0x7e5   :  { %1613 = vmatprep.subr.bf16.mxu1 %v3228_v59 }
 0x7e7   :  { %3067 = vmatpush3.bf16.msra.mxu0 %v3247_v15 }
 0x7e8   :  { %1614 = vmatpush1.bf16.msra.mxu1 %v3226_v61  ;;  %3072 = vmatprep.subr.bf16.mxu0 %v3385_v2 }
 0x7e9   :  { %1615 = vmatprep.subr.bf16.mxu1 %v3232_v62 }
 0x7ec   :  { %1616 = vmatpush1.bf16.msra.mxu1 %v3230_v0 }
 0x7ed   :  { %1617 = vmatprep.subr.bf16.mxu1 %v3236_v3 }
 0x7f0   :  { %1618 = vmatpush1.bf16.msra.mxu1 %v3234_v7 }
 0x7f1   :  { %1619 = vmatprep.subr.bf16.mxu1 %v3240_v9 }
 0x7f4   :  { %1620 = vmatpush1.bf16.msra.mxu1 %v3238_v11 }
 0x7f5   :  { %1621 = vmatprep.subr.bf16.mxu1 %v3244_v13 }
 0x7f8   :  { %1622 = vmatpush1.bf16.msra.mxu1 %v3242_v12 }
 0x7f9   :  { %3078 = vmatprep.subr.bf16.mxu1 %v3385_v2 }
 0x866   :  { %v1363_v32 = vpop.xlane.xlu0 %1362 }
 0x867   :  { %v1370_v38 = vmul.f32 0.0078125, %v1363_v32 }
 0x868   :  { %v1365_v39 = vpop.xlane.xlu1 %1364 }
 0x869   :  { %v3848_v40 = vsub.f32 %v1356_v58, %v1370_v38  ;;  %v1371_v42 = vmul.f32 0.0078125, %v1365_v39 }
 0x86b   :  { %v3850_v43 = vsub.f32 %v1357_v20, %v1371_v42  ;;  %v1378_v44 = vmul.f32 %v3848_v40, %v3848_v40 }
 0x86d   :  { %1382 = vadd.xlane.f32.xlu0 %v1378_v44  ;;  %v1379_v45 = vmul.f32 %v3850_v43, %v3850_v43 }
 0x86e   :  { %v1367_v46 = vpop.xlane.xlu0 %1366 }
 0x86f   :  { %v1372_v47 = vmul.f32 0.0078125, %v1367_v46  ;;  %1384 = vadd.xlane.f32.xlu1 %v1379_v45 }
 0x870   :  { %v1369_v48 = vpop.xlane.xlu1 %1368 }
 0x871   :  { %v3856_v49 = vsub.f32 %v1358_v31, %v1372_v47  ;;  %v1373_v37 = vmul.f32 0.0078125, %v1369_v48  ;;  %v2756_v48 = vld [vmem:[%s4177_s5 + $0x3] sm:$0x7] }
 0x872   :  { %v1467_v55 = vrot.slane %v2756_v48, %v3635_v8  ;;  %v1475_v60 = vrot.slane %v2756_v48, %v285_v33 }
 0x873   :  { %v3858_v52 = vsub.f32 %v1359_v35, %v1373_v37  ;;  %v1380_v53 = vmul.f32 %v3856_v49, %v3856_v49 }
 0x875   :  { %1386 = vadd.xlane.f32.xlu0 %v1380_v53  ;;  %v1381_v54 = vmul.f32 %v3858_v52, %v3858_v52 }
 0x877   :  { %1388 = vadd.xlane.f32.xlu1 %v1381_v54 }
 0x8fa   :  { %v1383_v16 = vpop.xlane.xlu0 %1382 }
 0x8fb   :  { %v1390_v17 = vmul.f32 0.0078125, %v1383_v16 }
 0x8fc   :  { %v1385_v56 = vpop.xlane.xlu1 %1384 }
 0x8fd   :  { %v1394_v51 = vadd.f32 1e-05, %v1390_v17  ;;  %v1391_v18 = vmul.f32 0.0078125, %v1385_v56 }
 0x8ff   :  { %3320 = vrsqrt.f32 %v1394_v51  ;;  %v1395_v19 = vadd.f32 1e-05, %v1391_v18 }
 0x901   :  { %3322 = vrsqrt.f32 %v1395_v19 }
 0x902   :  { %v1387_v58 = vpop.xlane.xlu0 %1386 }
 0x903   :  { %v1392_v21 = vmul.f32 0.0078125, %v1387_v58 }
 0x904   :  { %v1389_v20 = vpop.xlane.xlu1 %1388 }
 0x905   :  { %v1396_v24 = vadd.f32 1e-05, %v1392_v21  ;;  %v1393_v27 = vmul.f32 0.0078125, %v1389_v20 }
 0x907   :  { %3324 = vrsqrt.f32 %v1396_v24  ;;  %v1397_v26 = vadd.f32 1e-05, %v1393_v27 }
 0x909   :  { %v3321_v28 = vpop.eup %3320  ;;  %3326 = vrsqrt.f32 %v1397_v26 }
 0x90a   :  { %v1402_v34 = vmul.f32 %v3321_v28, %v3848_v40 }
 0x90b   :  { %v3323_v25 = vpop.eup %3322 }
 0x90c   :  { %v1412_v31 = vmul.f32 %v2722_v29, %v1402_v34  ;;  %v1403_v35 = vmul.f32 %v3323_v25, %v3850_v43 }
 0x90e   :  { %v1413_v23 = vmul.f32 %v2722_v29, %v1403_v35  ;;  %v3934_v36 = vadd.f32 %v2723_v22, %v1412_v31 }
 0x910   :  { %v3936_v30 = vadd.f32 %v2723_v22, %v1413_v23 }
 0x911   :  { %v3325_v32 = vpop.eup %3324 }
 0x912   :  { %v1426_v38 = vpack.c.bf16 %v3936_v30, %v3934_v36  ;;  %v1404_v39 = vmul.f32 %v3325_v32, %v3856_v49  ;;  %v1471_v49 = vrot.slane %v2756_v48, %v3628_v5 }
 0x913   :  { %v3327_v40 = vpop.eup %3326 }
 0x914   :  { %1640 = vmatmul.mubr.bf16.vlgmr.msra.gmra.mrb[32].mxu1 %v1426_v38  ;;  %3068 = vmatprep.mubr.bf16.mxu0 %v1426_v38  ;;  %v1405_v42 = vmul.f32 %v3327_v40, %v3858_v52  ;;  %v1414_v43 = vmul.f32 %v2722_v29, %v1404_v39 }
 0x915   :  { %1649 = vmatprep.mubr.bf16.mxu1 %v3384_v1 }
 0x916   :  { %v1415_v44 = vmul.f32 %v2722_v29, %v1405_v42  ;;  %v3943_v45 = vadd.f32 %v2723_v22, %v1414_v43 }
 0x918   :  { %v3945_v46 = vadd.f32 %v2723_v22, %v1415_v44 }
 0x91a   :  { %v1427_v47 = vpack.c.bf16 %v3945_v46, %v3943_v45 }
 0x91c   :  { %1650 = vmatmul.mubr.bf16.gmra.mrb[36].mxu1 %v1427_v47  ;;  %3069 = vmatmul.mubr.bf16.vlgmr.msra.gmra.mrb[36].mxu0 %v1427_v47 }
 0x91d   :  { %3074 = vmatprep.mubr.msk.bf16.mxu0 %vm3386_vm1, %v3385_v2  ;;  %3080 = vmatprep.mubr.msk.bf16.mxu1 %vm3386_vm1, %v3385_v2 }
 0x9e7   :  { %v1641_v37 = vpop.f32.mrb[32].mxu1 }
 0x9e8   :  { %v1643_v52 = vpop.f32.mrb[33].mxu1  ;;  %v1642_v62 = vadd.f32 %v1641_v37, %v1467_v55 }
 0x9e9   :  { %v1644_v53 = vadd.f32 %v1643_v52, %v1471_v49  ;;  %v1645_v54 = vpop.f32.mrb[34].mxu1 }
 0x9ea   :  { %v1647_v57 = vpop.f32.mrb[35].mxu1  ;;  %v1646_v3 = vadd.f32 %v1645_v54, %v1467_v55  ;;  %v1709_v4 = vpack.c.bf16 %v1642_v62, %v1642_v62 }
 0x9eb   :  { %v1713_v41 = vpack.c.bf16 %v1644_v53, %v1644_v53  ;;  %v1648_v59 = vadd.f32 %v1647_v57, %v1471_v49 }
 0x9ec   :  { %v1710_v16 = vpack.c.bf16 %v1646_v3, %v1646_v3 }
 0x9ed   :  { %v1714_v61 = vpack.c.bf16 %v1648_v59, %v1648_v59  ;;  %3073 = vmatpush3.bf16.xpose.msra.mxu0 %v1713_v41 }
 0x9ee   :  { %3084 = vmatprep.subr.bf16.mxu0 %v3385_v2 }
 0x9ef   :  { %v1651_v63 = vpop.f32.mrb[36].mxu1  ;;  %v3070_v0 = vpop.f32.mrb[36].mxu0  ;;  %3079 = vmatpush3.bf16.xpose.msra.mxu1 %v1714_v61 }
 0x9f0   :  { %v3961_v6 = vadd.f32 %v3070_v0, %v1475_v60  ;;  %v1653_v7 = vpop.f32.mrb[37].mxu1  ;;  %v1694_v9 = vpop.f32.mrb[37].mxu0  ;;  %3090 = vmatprep.subr.bf16.mxu1 %v3385_v2  ;;  %v1652_v51 = vadd.f32 %v1651_v63, %v1467_v55 }
 0x9f1   :  { %v1654_v10 = vadd.f32 %v1653_v7, %v1471_v49  ;;  %v1655_v11 = vpop.f32.mrb[38].mxu1  ;;  %v3071_v12 = vpop.f32.mrb[38].mxu0  ;;  %v1695_v17 = vadd.f32 %v1694_v9, %v1475_v60 }
 0x9f2   :  { %v3964_v33 = vadd.f32 %v3071_v12, %v1475_v60  ;;  %v1657_v13 = vpop.f32.mrb[39].mxu1  ;;  %v1697_v14 = vpop.f32.mrb[39].mxu0  ;;  %v1656_v58 = vadd.f32 %v1655_v11, %v1467_v55  ;;  %v1711_v21 = vpack.c.bf16 %v1652_v51, %v1652_v51  ;;  %v1927_v51 = vpack.c.bf16 %v3961_v6, %v3961_v6 }
 0x9f3   :  { %v1715_v50 = vpack.c.bf16 %v1654_v10, %v1654_v10  ;;  %v1658_v15 = vadd.f32 %v1657_v13, %v1471_v49  ;;  %v1698_v18 = vadd.f32 %v1697_v14, %v1475_v60  ;;  %v1925_v19 = vpack.c.bf16 %v1695_v17, %v1695_v17 }
 0x9f4   :  { %3075 = vmatmul.mubr.bf16.vlgmr.msra.gmra.mrb[40].mxu0 %v1709_v4  ;;  %v1712_v27 = vpack.c.bf16 %v1656_v58, %v1656_v58  ;;  %v1928_v58 = vpack.c.bf16 %v3964_v33, %v3964_v33 }
 0x9f5   :  { %v1716_v56 = vpack.c.bf16 %v1658_v15, %v1658_v15  ;;  %3085 = vmatpush3.bf16.xpose.msra.mxu0 %v1715_v50  ;;  %3086 = vmatprep.mubr.msk.bf16.mxu0 %vm3386_vm1, %v3385_v2  ;;  %v1926_v20 = vpack.c.bf16 %v1698_v18, %v1698_v18  ;;  %v1933_v24 = vsel %vm744_vm2, %v1925_v19, 0 }
 0x9f6   :  { %3081 = vmatmul.mubr.bf16.vlgmr.msra.gmra.mrb[40].mxu1 %v1710_v16  ;;  %3096 = vmatprep.subr.bf16.mxu0 %v3385_v2 }
 0x9f7   :  { %3091 = vmatpush3.bf16.xpose.msra.mxu1 %v1716_v56  ;;  %3092 = vmatprep.mubr.msk.bf16.mxu1 %vm3386_vm1, %v3385_v2  ;;  %v1979_v26 = vsel %vm744_vm2, %v1926_v20, 0 }
 0x9f8   :  { %3102 = vmatprep.subr.bf16.mxu1 %v3385_v2 }
 0x9fc   :  { %3087 = vmatmul.mubr.bf16.vlgmr.msra.gmra.mrb[44].mxu0 %v1711_v21 }
 0x9fd   :  { %3097 = vmatpush3.bf16.msra.mxu0 %v1933_v24  ;;  %3098 = vmatprep.mubr.msk.bf16.mxu0 %vm3386_vm1, %v3385_v2  ;;  %v2025_v24 = vsel %vm744_vm2, %v1927_v51, 0  ;;  %v3265_v51 = vld [vmem:[%s4180_s8 + $0xd4] ss:$8 sps:$4 sm:$0xff]  }
 0x9fe   :  { %3093 = vmatmul.mubr.bf16.vlgmr.msra.gmra.mrb[44].mxu1 %v1712_v27  ;;  %3108 = vmatprep.subr.bf16.mxu0 %v3385_v2 }
 0x9ff   :  { %3103 = vmatpush3.bf16.msra.mxu1 %v1979_v26  ;;  %3104 = vmatprep.mubr.msk.bf16.mxu1 %vm3386_vm1, %v3385_v2  ;;  %v2071_v26 = vsel %vm744_vm2, %v1928_v58, 0  ;;  %v3266_v58 = vld [vmem:[%s4180_s8 + $0xe0] ss:$8 sps:$4 sm:$0xff]  }
 0xa00   :  { %3114 = vmatprep.subr.bf16.mxu1 %v3385_v2 }
 0xac7   :  { %v1751_v28 = vpop.f32.mrb[40].mxu0 }
 0xac8   :  { %v3076_v29 = vpop.f32.mrb[41].mxu0  ;;  %v1877_v34 = vsel %vm688_vm3, %v1751_v28, -inf }
 0xac9   :  { %1878 = vmax.xlane.f32.xlu0 %v1877_v34  ;;  %v1754_v25 = vpop.f32.mrb[42].mxu0  ;;  %v1791_v31 = vpop.f32.mrb[40].mxu1 }
 0xaca   :  { %v3077_v35 = vpop.f32.mrb[43].mxu0  ;;  %v3082_v22 = vpop.f32.mrb[41].mxu1  ;;  %v1880_v23 = vsel %vm688_vm3, %v1791_v31, -inf }
 0xacb   :  { %1881 = vmax.xlane.f32.xlu1 %v1880_v23  ;;  %v1794_v32 = vpop.f32.mrb[42].mxu1 }
 0xacc   :  { %v3083_v38 = vpop.f32.mrb[43].mxu1 }
 0xacf   :  { %v1831_v39 = vpop.f32.mrb[44].mxu0 }
 0xad0   :  { %v3088_v40 = vpop.f32.mrb[45].mxu0  ;;  %v1883_v42 = vsel %vm688_vm3, %v1831_v39, -inf }
 0xad1   :  { %v1871_v43 = vpop.f32.mrb[44].mxu1  ;;  %1884 = vmax.xlane.f32.xlu0 %v1883_v42  ;;  %v1834_v44 = vpop.f32.mrb[46].mxu0 }
 0xad2   :  { %v3089_v47 = vpop.f32.mrb[47].mxu0  ;;  %v3094_v48 = vpop.f32.mrb[45].mxu1  ;;  %v1886_v49 = vsel %vm688_vm3, %v1871_v43, -inf }
 0xad3   :  { %1887 = vmax.xlane.f32.xlu1 %v1886_v49  ;;  %v1874_v37 = vpop.f32.mrb[46].mxu1 }
 0xad4   :  { %v3095_v52 = vpop.f32.mrb[47].mxu1 }
 0xb56   :  { %v1879_v53 = vpop.xlane.xlu0 %1878 }
 0xb57   :  { %v1889_v54 = vsub.f32 %v1751_v28, %v1879_v53 }
 0xb58   :  { %v1882_v55 = vpop.xlane.xlu1 %1881 }
 0xb59   :  { %v1893_v57 = vmul.f32 1.442695, %v1889_v54  ;;  %v1890_v41 = vsub.f32 %v1791_v31, %v1882_v55  ;;  %v3248_v54 = vld [vmem:[%s4180_s8 + $0x80] ss:$8 sps:$4 sm:$0xff]   ;;  %v3250_v55 = vld [vmem:[%s4180_s8 + $0x84] ss:$8 sps:$4 sm:$0xff]  }
 0xb5b   :  { %3328 = vpow2.f32 %v1893_v57  ;;  %v1895_v59 = vmul.f32 1.442695, %v1890_v41 }
 0xb5d   :  { %3330 = vpow2.f32 %v1895_v59 }
 0xb5e   :  { %v1885_v60 = vpop.xlane.xlu0 %1884 }
 0xb5f   :  { %v1891_v61 = vsub.f32 %v1831_v39, %v1885_v60 }
 0xb60   :  { %v1888_v62 = vpop.xlane.xlu1 %1887 }
 0xb61   :  { %v1897_v63 = vmul.f32 1.442695, %v1891_v61  ;;  %v1892_v0 = vsub.f32 %v1871_v43, %v1888_v62 }
 0xb63   :  { %3332 = vpow2.f32 %v1897_v63  ;;  %v1899_v3 = vmul.f32 1.442695, %v1892_v0 }
 0xb65   :  { %v3329_v7 = vpop.eup %3328  ;;  %3334 = vpow2.f32 %v1899_v3 }
 0xb66   :  { %v1901_v9 = vsel %vm688_vm3, %v3329_v7, 0.0 }
 0xb67   :  { %v3331_v10 = vpop.eup %3330  ;;  %1902 = vadd.xlane.f32.xlu0 %v1901_v9 }
 0xb68   :  { %v1904_v11 = vsel %vm688_vm3, %v3331_v10, 0.0 }
 0xb69   :  { %1905 = vadd.xlane.f32.xlu1 %v1904_v11 }
 0xb6d   :  { %v3333_v12 = vpop.eup %3332 }
 0xb6e   :  { %v1907_v4 = vsel %vm688_vm3, %v3333_v12, 0.0 }
 0xb6f   :  { %v3335_v13 = vpop.eup %3334  ;;  %1908 = vadd.xlane.f32.xlu0 %v1907_v4 }
 0xb70   :  { %v1910_v14 = vsel %vm688_vm3, %v3335_v13, 0.0 }
 0xb71   :  { %1911 = vadd.xlane.f32.xlu1 %v1910_v14  ;;  %v3256_v14 = vld [vmem:[%s4180_s8 + $0xa4] ss:$8 sps:$4 sm:$0xff]  }
 0xbf4   :  { %v1903_v50 = vpop.xlane.xlu0 %1902 }
 0xbf5   :  { %3336 = vrcp.f32 %v1903_v50  ;;  %v3254_v50 = vld [vmem:[%s4180_s8 + $0xa0] ss:$8 sps:$4 sm:$0xff]  }
 0xbf6   :  { %v1906_v15 = vpop.xlane.xlu1 %1905 }
 0xbf7   :  { %3338 = vrcp.f32 %v1906_v15  ;;  %v3259_v15 = vld [vmem:[%s4180_s8 + $0xb4] ss:$8 sps:$4 sm:$0xff]  }
 0xbfc   :  { %v1909_v16 = vpop.xlane.xlu0 %1908 }
 0xbfd   :  { %3340 = vrcp.f32 %v1909_v16  ;;  %v3257_v16 = vld [vmem:[%s4180_s8 + $0xb0] ss:$8 sps:$4 sm:$0xff]  }
 0xbfe   :  { %v1912_v17 = vpop.xlane.xlu1 %1911 }
 0xbff   :  { %v3337_v56 = vpop.eup %3336  ;;  %3342 = vrcp.f32 %v1912_v17  ;;  %v3262_v17 = vld [vmem:[%s4180_s8 + $0xc4] ss:$8 sps:$4 sm:$0xff]  }
 0xc00   :  { %v1917_v18 = vmul.f32 %v3337_v56, %v3329_v7  ;;  %v3260_v56 = vld [vmem:[%s4180_s8 + $0xc0] ss:$8 sps:$4 sm:$0xff]  }
 0xc01   :  { %v3339_v19 = vpop.eup %3338 }
 0xc02   :  { %v1918_v21 = vmul.f32 %v3339_v19, %v3331_v10  ;;  %v1921_v20 = vpack.c.bf16 %v1917_v18, %v1917_v18  ;;  %v3263_v18 = vld [vmem:[%s4180_s8 + $0xd0] ss:$8 sps:$4 sm:$0xff]   ;;  %v3268_v19 = vld [vmem:[%s4180_s8 + $0xe4] ss:$8 sps:$4 sm:$0xff]  }
 0xc04   :  { %3099 = vmatmul.mubr.msk.bf16.vlgmr.msra.gmra.mrb[48].mxu0 %vm688_vm3, %v1921_v20  ;;  %v1922_v27 = vpack.c.bf16 %v1918_v21, %v1918_v21  ;;  %v3271_v21 = vld [vmem:[%s4180_s8 + $0xf4] ss:$8 sps:$4 sm:$0xff]   ;;  %v3269_v20 = vld [vmem:[%s4180_s8 + $0xf0] ss:$8 sps:$4 sm:$0xff]  }
 0xc05   :  { %3109 = vmatpush3.bf16.msra.mxu0 %v2025_v24  ;;  %3110 = vmatprep.mubr.msk.bf16.mxu0 %vm3386_vm1, %v3385_v2  ;;  %v3272_v24 = vld [vmem:[%s4182_s10 + $0xc0] sm:$0xff]  }
 0xc06   :  { %3105 = vmatmul.mubr.msk.bf16.vlgmr.msra.gmra.mrb[48].mxu1 %vm688_vm3, %v1922_v27  ;;  %2297 = vmatprep.subr.bf16.mxu0 %v3250_v55  ;;  %v3273_v27 = vld [vmem:[%s4182_s10 + $0x80] sm:$0xff]  }
 0xc07   :  { %v3341_v6 = vpop.eup %3340  ;;  %3115 = vmatpush3.bf16.msra.mxu1 %v2071_v26  ;;  %3116 = vmatprep.mubr.msk.bf16.mxu1 %vm3386_vm1, %v3385_v2  ;;  %v3274_v26 = vld [vmem:[%s4182_s10 + $0xc8] sm:$0xff]  }
 0xc08   :  { %v1919_v33 = vmul.f32 %v3341_v6, %v3333_v12  ;;  %2956 = vmatprep.subr.bf16.mxu1 %v3272_v24  ;;  %v3275_v6 = vld [vmem:[%s4182_s10 + $0x88] sm:$0xff]  }
 0xc09   :  { %v3343_v28 = vpop.eup %3342 }
 0xc0a   :  { %v1920_v29 = vmul.f32 %v3343_v28, %v3335_v13  ;;  %v1923_v34 = vpack.c.bf16 %v1919_v33, %v1919_v33  ;;  %v3276_v33 = vld [vmem:[%s4182_s10 + $0xd0] sm:$0xff]  }
 0xc0b   :  { %v3277_v28 = vld [vmem:[%s4182_s10 + $0x90] sm:$0xff]  }
 0xc0c   :  { %3111 = vmatmul.mubr.msk.bf16.vlgmr.msra.gmra.mrb[52].mxu0 %vm688_vm3, %v1923_v34  ;;  %v1924_v25 = vpack.c.bf16 %v1920_v29, %v1920_v29  ;;  %v3278_v29 = vld [vmem:[%s4182_s10 + $0xd8] sm:$0xff]  }
 0xc0d   :  { %2329 = vmatprep.mubr.bf16.mxu0 %v3384_v1  ;;  %2298 = vmatpush1.bf16.msra.mxu0 %v3248_v54  ;;  %v3279_v34 = vld [vmem:[%s4182_s10 + $0x98] sm:$0xff]   ;;  %v2788_v54 = vld [vmem:[%s4179_s7 + $0x1] ss:$0 sm:$0xff] }
 0xc0e   :  { %3117 = vmatmul.mubr.msk.bf16.vlgmr.msra.gmra.mrb[52].mxu1 %vm688_vm3, %v1924_v25  ;;  %v3280_v25 = vld [vmem:[%s4182_s10 + $0xe0] sm:$0xff]  }
 0xc0f   :  { %2957 = vmatpush3.bf16.msra.mxu1 %v3273_v27 }
 0xc10   :  { %2958 = vmatprep.subr.bf16.mxu1 %v3274_v26 }
 0xc13   :  { %2959 = vmatpush3.bf16.msra.mxu1 %v3275_v6 }
 0xc14   :  { %2960 = vmatprep.subr.bf16.mxu1 %v3276_v33 }
 0xc17   :  { %2961 = vmatpush3.bf16.msra.mxu1 %v3277_v28 }
 0xc18   :  { %2962 = vmatprep.subr.bf16.mxu1 %v3278_v29 }
 0xc1b   :  { %2963 = vmatpush3.bf16.msra.mxu1 %v3279_v34 }
 0xc1c   :  { %2964 = vmatprep.subr.bf16.mxu1 %v3280_v25 }
 0xcd7   :  { %v1969_v31 = vpop.f32.mrb[48].mxu0 }
 0xcd8   :  { %v2113_v35 = vadd.f32 %v1969_v31, %v3934_v36  ;;  %v3100_v22 = vpop.f32.mrb[49].mxu0  ;;  %v3281_v31 = vld [vmem:[%s4182_s10 + $0xa0] sm:$0xff]  }
 0xcd9   :  { %v1972_v23 = vpop.f32.mrb[50].mxu0  ;;  %v2015_v32 = vpop.f32.mrb[48].mxu1  ;;  %2965 = vmatpush3.bf16.msra.mxu1 %v3281_v31 }
 0xcda   :  { %v2114_v38 = vadd.f32 %v2015_v32, %v3936_v30  ;;  %v3106_v2 = vpop.f32.mrb[49].mxu1  ;;  %2121 = vadd.xlane.f32.xlu0 %v2113_v35  ;;  %v3101_v39 = vpop.f32.mrb[51].mxu0 }
 0xcdb   :  { %v2018_v40 = vpop.f32.mrb[50].mxu1 }
 0xcdc   :  { %2123 = vadd.xlane.f32.xlu1 %v2114_v38  ;;  %v3107_v42 = vpop.f32.mrb[51].mxu1 }
 0xcdf   :  { %v2061_v43 = vpop.f32.mrb[52].mxu0 }
 0xce0   :  { %v2115_v44 = vadd.f32 %v2061_v43, %v3943_v45  ;;  %v3112_v47 = vpop.f32.mrb[53].mxu0  ;;  %v3253_v45 = vld [vmem:[%s4180_s8 + $0x94] ss:$8 sps:$4 sm:$0xff]  }
 0xce1   :  { %v2064_v48 = vpop.f32.mrb[54].mxu0  ;;  %v2107_v49 = vpop.f32.mrb[52].mxu1  ;;  %2299 = vmatprep.subr.bf16.mxu0 %v3253_v45 }
 0xce2   :  { %v2116_v37 = vadd.f32 %v2107_v49, %v3945_v46  ;;  %v3118_v36 = vpop.f32.mrb[53].mxu1  ;;  %2125 = vadd.xlane.f32.xlu0 %v2115_v44  ;;  %v3113_v52 = vpop.f32.mrb[55].mxu0  ;;  %v3251_v46 = vld [vmem:[%s4180_s8 + $0x90] ss:$8 sps:$4 sm:$0xff]  }
 0xce3   :  { %v2110_v53 = vpop.f32.mrb[54].mxu1  ;;  %2300 = vmatpush1.bf16.msra.mxu0 %v3251_v46 }
 0xce4   :  { %2127 = vadd.xlane.f32.xlu1 %v2116_v37  ;;  %v3119_v30 = vpop.f32.mrb[55].mxu1  ;;  %2301 = vmatprep.subr.bf16.mxu0 %v3256_v14 }
 0xce7   :  { %2302 = vmatpush1.bf16.msra.mxu0 %v3254_v50 }
 0xce8   :  { %2303 = vmatprep.subr.bf16.mxu0 %v3259_v15 }
 0xceb   :  { %2304 = vmatpush1.bf16.msra.mxu0 %v3257_v16 }
 0xcec   :  { %2305 = vmatprep.subr.bf16.mxu0 %v3262_v17 }
 0xcef   :  { %2306 = vmatpush1.bf16.msra.mxu0 %v3260_v56 }
 0xcf0   :  { %2307 = vmatprep.subr.bf16.mxu0 %v3265_v51 }
 0xcf3   :  { %2308 = vmatpush1.bf16.msra.mxu0 %v3263_v18 }
 0xcf4   :  { %2309 = vmatprep.subr.bf16.mxu0 %v3268_v19 }
 0xcf7   :  { %2310 = vmatpush1.bf16.msra.mxu0 %v3266_v58 }
 0xcf8   :  { %2311 = vmatprep.subr.bf16.mxu0 %v3271_v21 }
 0xcfb   :  { %2312 = vmatpush1.bf16.msra.mxu0 %v3269_v20 }
 0xd67   :  { %v2122_v57 = vpop.xlane.xlu0 %2121 }
 0xd68   :  { %v2129_v41 = vmul.f32 0.0078125, %v2122_v57 }
 0xd69   :  { %v2124_v59 = vpop.xlane.xlu1 %2123 }
 0xd6a   :  { %v4019_v60 = vsub.f32 %v2113_v35, %v2129_v41  ;;  %v2130_v61 = vmul.f32 0.0078125, %v2124_v59  ;;  %v3282_v35 = vld [vmem:[%s4182_s10 + $0xe8] sm:$0xff]  }
 0xd6b   :  { %2966 = vmatprep.subr.bf16.mxu1 %v3282_v35 }
 0xd6c   :  { %v4021_v62 = vsub.f32 %v2114_v38, %v2130_v61  ;;  %v2137_v63 = vmul.f32 %v4019_v60, %v4019_v60 }
 0xd6e   :  { %2141 = vadd.xlane.f32.xlu0 %v2137_v63  ;;  %v2138_v0 = vmul.f32 %v4021_v62, %v4021_v62 }
 0xd6f   :  { %v2126_v3 = vpop.xlane.xlu0 %2125 }
 0xd70   :  { %v2131_v7 = vmul.f32 0.0078125, %v2126_v3  ;;  %2143 = vadd.xlane.f32.xlu1 %v2138_v0 }
 0xd71   :  { %v2128_v9 = vpop.xlane.xlu1 %2127 }
 0xd72   :  { %v4027_v10 = vsub.f32 %v2115_v44, %v2131_v7  ;;  %v2132_v11 = vmul.f32 0.0078125, %v2128_v9  ;;  %v3283_v9 = vld [vmem:[%s4182_s10 + $0xa8] sm:$0xff]  }
 0xd73   :  { %2967 = vmatpush3.bf16.msra.mxu1 %v3283_v9 }
 0xd74   :  { %v4029_v12 = vsub.f32 %v2116_v37, %v2132_v11  ;;  %v2139_v4 = vmul.f32 %v4027_v10, %v4027_v10  ;;  %v2787_v37 = vld [vmem:[%s4178_s6 + $0x1] ss:$0 sm:$0xff]  ;;  %v3286_v11 = vld [vmem:[%s4182_s10 + $0xf8] sm:$0xff]  }
 0xd76   :  { %2145 = vadd.xlane.f32.xlu0 %v2139_v4  ;;  %v2140_v13 = vmul.f32 %v4029_v12, %v4029_v12  ;;  %v2805_v4 = vld [vmem:[%s4181_s9 + $0x2] sm:$0x3] }
 0xd77   :  { %v2214_v14 = vrot.slane %v2805_v4, %v3628_v5 }
 0xd78   :  { %2147 = vadd.xlane.f32.xlu1 %v2140_v13  ;;  %v2210_v13 = vrot.slane %v2805_v4, %v3635_v8 }
 0xdfb   :  { %v2142_v22 = vpop.xlane.xlu0 %2141 }
 0xdfc   :  { %v2149_v23 = vmul.f32 0.0078125, %v2142_v22 }
 0xdfd   :  { %v2144_v32 = vpop.xlane.xlu1 %2143 }
 0xdfe   :  { %v2153_v38 = vadd.f32 1e-05, %v2149_v23  ;;  %v2150_v2 = vmul.f32 0.0078125, %v2144_v32 }
 0xe00   :  { %3344 = vrsqrt.f32 %v2153_v38  ;;  %v2154_v39 = vadd.f32 1e-05, %v2150_v2 }
 0xe02   :  { %3346 = vrsqrt.f32 %v2154_v39  ;;  %v2855_v39 = vld [vmem:[%s4183_s11 + $0x1] ss:$0 sm:$0xff] }
 0xe03   :  { %v2146_v40 = vpop.xlane.xlu0 %2145 }
 0xe04   :  { %v2151_v42 = vmul.f32 0.0078125, %v2146_v40 }
 0xe05   :  { %v2148_v43 = vpop.xlane.xlu1 %2147 }
 0xe06   :  { %v2155_v44 = vadd.f32 1e-05, %v2151_v42  ;;  %v2152_v47 = vmul.f32 0.0078125, %v2148_v43 }
 0xe08   :  { %3348 = vrsqrt.f32 %v2155_v44  ;;  %v2156_v48 = vadd.f32 1e-05, %v2152_v47 }
 0xe0a   :  { %v3345_v49 = vpop.eup %3344  ;;  %3350 = vrsqrt.f32 %v2156_v48 }
 0xe0b   :  { %v2161_v36 = vmul.f32 %v3345_v49, %v4019_v60 }
 0xe0c   :  { %v3347_v52 = vpop.eup %3346 }
 0xe0d   :  { %v2162_v53 = vmul.f32 %v3347_v52, %v4021_v62  ;;  %v2171_v30 = vmul.f32 %v2787_v37, %v2161_v36 }
 0xe0f   :  { %v2172_v55 = vmul.f32 %v2787_v37, %v2162_v53  ;;  %v4112_v45 = vadd.f32 %v2788_v54, %v2171_v30 }
 0xe11   :  { %v4114_v46 = vadd.f32 %v2788_v54, %v2172_v55 }
 0xe12   :  { %v3349_v57 = vpop.eup %3348 }
 0xe13   :  { %v2185_v41 = vpack.c.bf16 %v4114_v46, %v4112_v45  ;;  %v2163_v59 = vmul.f32 %v3349_v57, %v4027_v10  ;;  %v3284_v10 = vld [vmem:[%s4182_s10 + $0xf0] sm:$0xff]  }
 0xe14   :  { %v3351_v60 = vpop.eup %3350  ;;  %2968 = vmatprep.subr.bf16.mxu1 %v3284_v10 }
 0xe15   :  { %2330 = vmatmul.mubr.bf16.vlgmr.msra.gmra.mrb[56].mxu0 %v2185_v41  ;;  %v2164_v61 = vmul.f32 %v3351_v60, %v4029_v12  ;;  %v2173_v62 = vmul.f32 %v2787_v37, %v2163_v59  ;;  %v3287_v12 = vld [vmem:[%s4182_s10 + $0xb8] sm:$0xff]  }
 0xe16   :  { %2339 = vmatprep.mubr.bf16.mxu0 %v3384_v1  ;;  %v3285_v1 = vld [vmem:[%s4182_s10 + $0xb0] sm:$0xff]  }
 0xe17   :  { %v2174_v63 = vmul.f32 %v2787_v37, %v2164_v61  ;;  %v4121_v0 = vadd.f32 %v2788_v54, %v2173_v62  ;;  %2969 = vmatpush3.bf16.msra.mxu1 %v3285_v1 }
 0xe18   :  { %2970 = vmatprep.subr.bf16.mxu1 %v3286_v11 }
 0xe19   :  { %v4123_v3 = vadd.f32 %v2788_v54, %v2174_v63 }
 0xe1b   :  { %v2186_v7 = vpack.c.bf16 %v4123_v3, %v4121_v0  ;;  %2971 = vmatpush3.bf16.msra.mxu1 %v3287_v12 }
 0xe1d   :  { %2340 = vmatmul.mubr.bf16.gmra.mrb[60].mxu0 %v2186_v7 }
 0xee8   :  { %v2331_v50 = vpop.f32.mrb[56].mxu0 }
 0xee9   :  { %v2332_v15 = vadd.f32 %v2331_v50, %v2210_v13  ;;  %v2333_v16 = vpop.f32.mrb[57].mxu0 }
 0xeea   :  { %v2334_v17 = vadd.f32 %v2333_v16, %v2214_v14  ;;  %v2335_v56 = vpop.f32.mrb[58].mxu0 }
 0xeeb   :  { %v2336_v51 = vadd.f32 %v2335_v56, %v2210_v13  ;;  %v2337_v18 = vpop.f32.mrb[59].mxu0  ;;  %v2350_v58 = vmax.f32 %v2332_v15, 0.0 }
 0xeec   :  { %v2338_v19 = vadd.f32 %v2337_v18, %v2214_v14  ;;  %v2351_v20 = vmax.f32 %v2334_v17, 0.0 }
 0xeed   :  { %v2352_v21 = vmax.f32 %v2336_v51, 0.0 }
 0xeee   :  { %v2353_v24 = vmax.f32 %v2338_v19, 0.0 }
 0xeef   :  { %v2358_v27 = vpack.c.bf16 %v2352_v21, %v2350_v58 }
 0xef0   :  { %v2359_v26 = vpack.c.bf16 %v2353_v24, %v2351_v20  ;;  %v2341_v6 = vpop.f32.mrb[60].mxu0 }
 0xef1   :  { %v2342_v33 = vadd.f32 %v2341_v6, %v2210_v13  ;;  %v2343_v28 = vpop.f32.mrb[61].mxu0  ;;  %v2874_v6 = vld [vmem:[%s4184_s12 + $0x1] ss:$0 sm:$0xff]  ;;  %s3387_s12 = smov [#allocation2]  }
 0xef2   :  { %v2344_v8 = vadd.f32 %v2343_v28, %v2214_v14  ;;  %v2345_v29 = vpop.f32.mrb[62].mxu0  ;;  %2531 = vmatprep.mubr.bf16.mxu1 %v2359_v26  ;;  %s2629_s1 = sshll.u32 %s3387_s12, 4  ;;  %s2630_s1 = int_to_ptr.vmem [resolvable:$true] %s2629_s1 }
 0xef3   :  { %v2346_v5 = vadd.f32 %v2345_v29, %v2210_v13  ;;  %v2347_v34 = vpop.f32.mrb[63].mxu0  ;;  %2532 = vmatmul.mubr.bf16.vlgmr.msra.gmra.mrb[56].mxu1 %v2358_v27  ;;  %v2354_v31 = vmax.f32 %v2342_v33, 0.0  ;;  %p3365_p1 = scmp.lt.s32.totalorder %s2630_s1, %s2630_s1 }
 0xef4   :  { %v2348_v25 = vadd.f32 %v2347_v34, %v2214_v14  ;;  %v2355_v22 = vmax.f32 %v2344_v8, 0.0  ;;  %v2875_v8 = vld [vmem:[%s4185_s13 + $0x1] ss:$0 sm:$0xff]  ;;  %s3360_s13 = scalar_lea.vmem %s2630_s1, 512 }
 0xef5   :  { %v2356_v35 = vmax.f32 %v2346_v5, 0.0  ;;  %p3361_p0 = scmp.ne.s32.totalorder %s2630_s1, %s3360_s13  ;;  %p3366_p2 = scmp.lt.s32.totalorder %s3360_s13, %s3360_s13 }
 0xef6   :  { %v2357_v23 = vmax.f32 %v2348_v25, 0.0 }
 0xef7   :  { %v2360_v32 = vpack.c.bf16 %v2356_v35, %v2354_v31  ;;  %p3367_p3 = por %p3366_p2, %p3365_p1 }
 0xef8   :  { %v2361_v38 = vpack.c.bf16 %v2357_v23, %v2355_v22 }
 0xef9   :  { %p3368_p4 = pnand %p3367_p3, %p3361_p0 }
 0xefa   :  { %2539 = vmatprep.mubr.bf16.mxu1 %v2361_v38 }
 0xefb   :  { %2540 = vmatmul.mubr.bf16.gmra.mrb[60].mxu1 %v2360_v32 }
 0xfc6   :  { %v2972_v2 = vpop.f32.mrb[56].mxu1 }
 0xfc7   :  { %v2973_v40 = vpop.f32.mrb[57].mxu1 }
 0xfc8   :  { %v2974_v42 = vadd.f32 %v2973_v40, %v2972_v2  ;;  %v2975_v43 = vpop.f32.mrb[58].mxu1 }
 0xfc9   :  { %v2976_v44 = vpop.f32.mrb[59].mxu1 }
 0xfca   :  { %v2534_v47 = vadd.f32 %v2974_v42, %v2855_v39  ;;  %v2977_v48 = vadd.f32 %v2976_v44, %v2975_v43 }
 0xfcc   :  { %v2537_v49 = vadd.f32 %v2977_v48, %v2855_v39  ;;  %v2548_v37 = vadd.f32 %v2534_v47, %v4112_v45 }
 0xfce   :  { %v2978_v36 = vpop.f32.mrb[60].mxu1  ;;  %2556 = vadd.xlane.f32.xlu0 %v2548_v37  ;;  %v2549_v52 = vadd.f32 %v2537_v49, %v4114_v46 }
 0xfcf   :  { %v2979_v53 = vpop.f32.mrb[61].mxu1 }
 0xfd0   :  { %v2980_v30 = vadd.f32 %v2979_v53, %v2978_v36  ;;  %v2981_v54 = vpop.f32.mrb[62].mxu1  ;;  %2558 = vadd.xlane.f32.xlu1 %v2549_v52 }
 0xfd1   :  { %v2982_v55 = vpop.f32.mrb[63].mxu1 }
 0xfd2   :  { %v2542_v57 = vadd.f32 %v2980_v30, %v2855_v39  ;;  %v2983_v41 = vadd.f32 %v2982_v55, %v2981_v54 }
 0xfd4   :  { %v2545_v59 = vadd.f32 %v2983_v41, %v2855_v39  ;;  %v2550_v60 = vadd.f32 %v2542_v57, %v4121_v0 }
 0xfd6   :  { %2560 = vadd.xlane.f32.xlu0 %v2550_v60  ;;  %v2551_v61 = vadd.f32 %v2545_v59, %v4123_v3 }
 0xfd8   :  { %2562 = vadd.xlane.f32.xlu1 %v2551_v61 }
0x105b   :  { %v2557_v62 = vpop.xlane.xlu0 %2556 }
0x105c   :  { %v2564_v45 = vmul.f32 0.0078125, %v2557_v62 }
0x105d   :  { %v2559_v63 = vpop.xlane.xlu1 %2558 }
0x105e   :  { %v2568_v7 = vsub.f32 %v2548_v37, %v2564_v45  ;;  %v2565_v9 = vmul.f32 0.0078125, %v2559_v63 }
0x1060   :  { %v2569_v46 = vsub.f32 %v2549_v52, %v2565_v9  ;;  %v2572_v10 = vmul.f32 %v2568_v7, %v2568_v7 }
0x1062   :  { %2576 = vadd.xlane.f32.xlu0 %v2572_v10  ;;  %v2573_v1 = vmul.f32 %v2569_v46, %v2569_v46 }
0x1063   :  { %v2561_v11 = vpop.xlane.xlu0 %2560 }
0x1064   :  { %v2566_v12 = vmul.f32 0.0078125, %v2561_v11  ;;  %2578 = vadd.xlane.f32.xlu1 %v2573_v1 }
0x1065   :  { %v2563_v4 = vpop.xlane.xlu1 %2562 }
0x1066   :  { %v2570_v13 = vsub.f32 %v2550_v60, %v2566_v12  ;;  %v2567_v14 = vmul.f32 0.0078125, %v2563_v4 }
0x1068   :  { %v2571_v0 = vsub.f32 %v2551_v61, %v2567_v14  ;;  %v2574_v50 = vmul.f32 %v2570_v13, %v2570_v13 }
0x106a   :  { %2580 = vadd.xlane.f32.xlu0 %v2574_v50  ;;  %v2575_v3 = vmul.f32 %v2571_v0, %v2571_v0 }
0x106c   :  { %2582 = vadd.xlane.f32.xlu1 %v2575_v3 }
0x10ef   :  { %v2577_v15 = vpop.xlane.xlu0 %2576 }
0x10f0   :  { %v2584_v16 = vmul.f32 0.0078125, %v2577_v15 }
0x10f1   :  { %v2579_v17 = vpop.xlane.xlu1 %2578 }
0x10f2   :  { %v2588_v56 = vadd.f32 1e-05, %v2584_v16  ;;  %v2585_v51 = vmul.f32 0.0078125, %v2579_v17 }
0x10f4   :  { %3352 = vrsqrt.f32 %v2588_v56  ;;  %v2589_v18 = vadd.f32 1e-05, %v2585_v51 }
0x10f6   :  { %3354 = vrsqrt.f32 %v2589_v18 }
0x10f7   :  { %v2581_v19 = vpop.xlane.xlu0 %2580 }
0x10f8   :  { %v2586_v58 = vmul.f32 0.0078125, %v2581_v19 }
0x10f9   :  { %v2583_v21 = vpop.xlane.xlu1 %2582 }
0x10fa   :  { %v2590_v20 = vadd.f32 1e-05, %v2586_v58  ;;  %v2587_v24 = vmul.f32 0.0078125, %v2583_v21 }
0x10fc   :  { %3356 = vrsqrt.f32 %v2590_v20  ;;  %v2591_v27 = vadd.f32 1e-05, %v2587_v24 }
0x10fe   :  { %v3353_v26 = vpop.eup %3352  ;;  %3358 = vrsqrt.f32 %v2591_v27 }
0x10ff   :  { %v2596_v33 = vmul.f32 %v3353_v26, %v2568_v7 }
0x1100   :  { %v3355_v28 = vpop.eup %3354 }
0x1101   :  { %v2606_v29 = vmul.f32 %v2874_v6, %v2596_v33  ;;  %v2597_v5 = vmul.f32 %v3355_v28, %v2569_v46 }
0x1103   :  { %v2607_v34 = vmul.f32 %v2874_v6, %v2597_v5  ;;  %v2616_v25 = vadd.f32 %v2875_v8, %v2606_v29 }
0x1105   :  { %v2617_v31 = vadd.f32 %v2875_v8, %v2607_v34  ;;  %2620 = vst [vmem:[#allocation2] sm:$0xff] %v2616_v25 }
0x1106   :  { %v3357_v35 = vpop.eup %3356 }
0x1107   :  { %v2598_v22 = vmul.f32 %v3357_v35, %v2570_v13  ;;  %2621 = vst [vmem:[#allocation2 + $0x8] sm:$0xff] %v2617_v31 }
0x1108   :  { %v3359_v23 = vpop.eup %3358 }
0x1109   :  { %v2608_v32 = vmul.f32 %v2874_v6, %v2598_v22  ;;  %v2599_v38 = vmul.f32 %v3359_v23, %v2571_v0 }
0x110b   :  { %v2618_v2 = vadd.f32 %v2875_v8, %v2608_v32  ;;  %v2609_v39 = vmul.f32 %v2874_v6, %v2599_v38 }
0x110d   :  { %2622 = vst [vmem:[#allocation2 + $0x10] sm:$0xff] %v2618_v2  ;;  %v2619_v40 = vadd.f32 %v2875_v8, %v2609_v39 }
0x110f   :  { %2623 = vst [vmem:[#allocation2 + $0x18] sm:$0xff] %v2619_v40 }
0x1110   :  { %3371 = shalt.err (!%p3368_p4)
}
0x1111   :  { %s3372_s19 = scalar_lea.hbm %s4186_s14, 512 }
0x1112   :  { %p3373_p5 = scmp.ne.s32.totalorder %s4186_s14, %s3372_s19  ;;  %p3376_p6 = scmp.lt.u32.totalorder %s3372_s19, %s4186_s14 }
0x1114   :  { %p3378_p7 = pnand %p3376_p6, %p3373_p5 }
0x1116   :  { %3381 = shalt.err (!%p3378_p7)
}
0x1117   :  { %s3388_s24 = smov 128   ;;  %s3389_s25 = smov 8  }
0x1118   :  { %2635 = dma.vmem_to_hbm [thread:$0]  %s2630_s1, 512, %s4186_s14, [#allocation3], %s3388_s24, %s3388_s24, %s3389_s25  }
0x1119   :  { %3382 = dma.done.wait [#allocation3], 512  }
0x111a   :  { %3383 = vsyncadd [#allocation3], 4294966784 }
0x111b   :  { %2639 = vsyncpa [#allocation3], 1 }

</bundles_post_ra>
